<compile_context>
chip_gen: v7x
topology: tpu7x:2x2x1
jax: 0.10.0
libtpu: 0.0.40
codegen_flags: <defaults>
</compile_context>

<pallas_src>
import functools

import jax
import jax.numpy as jnp
from jax.experimental import pallas as pl
from jax.experimental.pallas import tpu as pltpu


def _round_up(x, m):
    return ((x + m - 1) // m) * m


def _make_kernel(n_out, wp, slope):
    """Kernel closure over static geometry (flat output rows per band, padded width)."""

    def kernel(x_ref, w1_ref, b1_ref, w2_ref, b2_ref, o_ref):
        # x_ref : (N_IN, Cin)      bf16  width-padded, row-flattened activation band
        # w1_ref: (9, Cin, Cmid)   bf16  3x3 taps, BN scale pre-folded
        # b1_ref: (1, Cmid)        f32   folded BN bias (beta - mean * scale)
        # w2_ref: (Cmid, CoutP)    bf16  1x1 conv weights, zero-padded to 128 lanes
        # b2_ref: (1, CoutP)       f32
        # o_ref : (N_OUT, CoutP)   f32
        #
        # 3x3 conv as 9 shifted matmuls: output flat row q reads input flat row
        # q + ky*Wp + kx (Wp = W + 2).  The shifts are static row-window slices of
        # the resident VMEM block — no im2col intermediate ever touches HBM.
        acc = jnp.dot(x_ref[pl.ds(0, n_out), :], w1_ref[0],
                      preferred_element_type=jnp.float32)
        for ky in range(3):
            for kx in range(3):
                if ky == 0 and kx == 0:
                    continue
                off = ky * wp + kx
                acc = acc + jnp.dot(x_ref[pl.ds(off, n_out), :],
                                    w1_ref[ky * 3 + kx],
                                    preferred_element_type=jnp.float32)
        h = acc + b1_ref[...]              # folded BatchNorm (eval mode)
        h = jnp.maximum(h, slope * h)      # LeakyReLU(0.1): mul + max (no select)
        out = jnp.dot(h.astype(w2_ref.dtype), w2_ref[...],
                      preferred_element_type=jnp.float32) + b2_ref[...]
        o_ref[...] = out.astype(o_ref.dtype)

    return kernel


def _choose_bands(batch, h, wp, row_tile):
    """Largest divisor n of H such that (H//n)*Wp >= row_tile; bump so grid >= 2
    when possible (v7x megacore needs >= 2 'parallel' tiles)."""
    n_bands = 1
    for n in range(1, h + 1):
        if h % n == 0 and (h // n) * wp >= row_tile:
            n_bands = n
    if batch * n_bands < 2:
        for n in range(2, h + 1):
            if h % n == 0:
                n_bands = n
                break
    return n_bands


@functools.partial(jax.jit, static_argnums=(2,), static_argnames=("row_tile",))
def scale_prediction_pallas_nhwc(x_nhwc, params, num_classes, *, row_tile=512):
    """ScalePrediction forward.  x_nhwc: (B, H, W, Cin) channels-last.
    Returns (B, 3, H, W, num_classes + 5) float32 (BatchNorm in eval mode)."""
    w1, gamma, beta, r_mean, r_var, w2, b2 = (
        params["w1"], params["gamma"], params["beta"],
        params["running_mean"], params["running_var"],
        params["w2"], params["b2"],
    )
    eps = 1e-5
    B, H, W, Cin = x_nhwc.shape
    Cmid = w1.shape[0]                     # 2 * in_channels
    Cout = w2.shape[0]                     # 3 * (num_classes + 5)
    assert Cout == 3 * (num_classes + 5)
    Wp = W + 2

    # ---- fold BN scale into conv1 weights; pack tap-major as (9, Cin, Cmid) ----
    inv_std = (gamma / jnp.sqrt(r_var + eps)).astype(jnp.float32)
    w1_taps = jnp.transpose(w1.astype(jnp.float32), (2, 3, 1, 0)).reshape(9, Cin, Cmid)
    w1_taps = (w1_taps * inv_std[None, None, :]).astype(jnp.bfloat16)
    b1_row = (beta - r_mean * inv_std).reshape(1, Cmid).astype(jnp.float32)

    cout_pad = _round_up(Cout, 128)        # lane-dense output stores
    w2_mat = jnp.transpose(w2[:, :, 0, 0].astype(jnp.float32), (1, 0))
    w2_pad = (jnp.zeros((Cmid, cout_pad), jnp.float32)
              .at[:, :Cout].set(w2_mat).astype(jnp.bfloat16))
    b2_row = jnp.zeros((1, cout_pad), jnp.float32).at[:, :Cout].set(
        b2.reshape(1, Cout).astype(jnp.float32))

    # ---- band the activation: spatial zero-pad, split H into bands w/ 2-row halo ----
    # NOTE: fully zero-copy halo streaming (memory_space=pl.ANY + manual
    # make_async_copy) would remove the small banded duplicate entirely; the
    # BlockSpec path below already removes the 9x im2col expansion.
    n_bands = _choose_bands(B, H, Wp, row_tile)
    bh = H // n_bands
    n_out = bh * Wp                              # flat output rows per band
    n_in = _round_up((bh + 2) * Wp + 2, 16)      # +2: garbage cols of last row read past

    x_pad = jnp.pad(x_nhwc.astype(jnp.bfloat16), ((0, 0), (1, 1), (1, 1), (0, 0)))
    bands = jnp.stack([x_pad[:, i * bh:i * bh + bh + 2] for i in range(n_bands)],
                      axis=1)                    # (B, n_bands, bh+2, Wp, Cin)
    x_flat = bands.reshape(B * n_bands, (bh + 2) * Wp, Cin)
    x_flat = jnp.pad(x_flat, ((0, 0), (0, n_in - (bh + 2) * Wp), (0, 0)))

    grid = (B * n_bands,)

    # ---- cost hint / VMEM budget (weights double-buffered by default pipeline) ----
    flops = B * n_bands * 2 * n_out * (9 * Cin * Cmid + Cmid * cout_pad)
    bytes_accessed = (x_flat.size * 2 + w1_taps.size * 2 + w2_pad.size * 2
                      + (b1_row.size + b2_row.size) * 4
                      + B * n_bands * n_out * cout_pad * 4)
    resident = (2 * (w1_taps.size + w2_pad.size) * 2
                + 2 * (b1_row.size + b2_row.size) * 4)
    per_step = 2 * n_in * Cin * 2 + 2 * n_out * cout_pad * 4
    interm = 3 * n_out * Cmid * 4 + 2 * n_out * Cin * 2 + n_out * cout_pad * 4
    vmem_limit = int(min(48 << 20, max(32 << 20, (resident + per_step + interm) * 5 // 4)))

    kernel = _make_kernel(n_out, Wp, 0.1)
    out_flat = pl.pallas_call(
        kernel,
        out_shape=jax.ShapeDtypeStruct((B * n_bands, n_out, cout_pad), jnp.float32),
        grid_spec=pltpu.PrefetchScalarGridSpec(
            num_scalar_prefetch=0,
            grid=grid,
            in_specs=[
                pl.BlockSpec((None, n_in, Cin), lambda i: (i, 0, 0)),   # activation band
                # Resident operands (constant index map -> DMA'd once per core).
                pl.BlockSpec((9, Cin, Cmid), lambda i: (0, 0, 0)),
                pl.BlockSpec((1, Cmid), lambda i: (0, 0)),
                pl.BlockSpec((Cmid, cout_pad), lambda i: (0, 0)),
                pl.BlockSpec((1, cout_pad), lambda i: (0, 0)),
            ],
            out_specs=pl.BlockSpec((None, n_out, cout_pad), lambda i: (i, 0, 0)),
        ),
        compiler_params=pltpu.CompilerParams(
            dimension_semantics=("parallel",),
            vmem_limit_bytes=vmem_limit),
        cost_estimate=pl.CostEstimate(
            flops=flops, transcendentals=0, bytes_accessed=bytes_accessed),
    )(x_flat, w1_taps, b1_row, w2_pad, b2_row)

    # ---- drop padded columns / channels, reproduce reshape+permute of the module ----
    out = out_flat[:, :, :Cout].reshape(B, n_bands, bh, Wp, Cout)[:, :, :, :W, :]
    out = out.reshape(B, H, W, 3, num_classes + 5)
    return jnp.transpose(out, (0, 3, 1, 2, 4))


def scale_prediction_pallas(x_nchw, params, num_classes, **kwargs):
    """NCHW entry point matching the PyTorch module's interface.  Prefer the NHWC
    function above when the producer is already channels-last (skips a full
    activation transpose in HBM)."""
    x_nhwc = jnp.transpose(x_nchw, (0, 2, 3, 1))
    return scale_prediction_pallas_nhwc(x_nhwc, params, num_classes, **kwargs)


def scale_prediction_ref(x_nchw, params, num_classes):
    """Pure-JAX f32 reference mirroring the PyTorch module (BN in eval mode)."""
    eps = 1e-5
    B, _, H, W = x_nchw.shape
    y = jax.lax.conv_general_dilated(
        x_nchw, params["w1"], (1, 1), ((1, 1), (1, 1)),
        dimension_numbers=("NCHW", "OIHW", "NCHW"))
    g = params["gamma"][None, :, None, None]
    b = params["beta"][None, :, None, None]
    m = params["running_mean"][None, :, None, None]
    v = params["running_var"][None, :, None, None]
    y = (y - m) / jnp.sqrt(v + eps) * g + b
    y = jnp.where(y > 0, y, 0.1 * y)
    y = jax.lax.conv_general_dilated(
        y, params["w2"], (1, 1), "VALID",
        dimension_numbers=("NCHW", "OIHW", "NCHW")) + params["b2"][None, :, None, None]
    return y.reshape(B, 3, num_classes + 5, H, W).transpose(0, 1, 3, 4, 2)


def init_params(key, in_channels, num_classes):
    cmid = 2 * in_channels
    cout = 3 * (num_classes + 5)
    k1, k2, k3, k4, k5 = jax.random.split(key, 5)
    return {
        "w1": 0.1 * jax.random.normal(k1, (cmid, in_channels, 3, 3), jnp.float32),
        "gamma": 1.0 + 0.1 * jax.random.normal(k2, (cmid,), jnp.float32),
        "beta": 0.1 * jax.random.normal(k3, (cmid,), jnp.float32),
        "running_mean": 0.05 * jnp.arange(cmid, dtype=jnp.float32),
        "running_var": 1.0 + 0.02 * jnp.arange(cmid, dtype=jnp.float32),
        "w2": 0.1 * jax.random.normal(k4, (cout, cmid, 1, 1), jnp.float32),
        "b2": 0.1 * jax.random.normal(k5, (cout,), jnp.float32),
    }


if __name__ == "__main__":
    B, Cin, H, W = 2, 4, 16, 16
    num_classes = 3

    key = jax.random.PRNGKey(0)
    kx, kp = jax.random.split(key)
    x = jax.random.normal(kx, (B, Cin, H, W), jnp.float32)
    params = init_params(kp, Cin, num_classes)

    ref = scale_prediction_ref(x, params, num_classes)

    # Default path: single band per image (grid = B).
    out = jax.block_until_ready(scale_prediction_pallas(x, params, num_classes))
    assert out.shape == (B, 3, H, W, num_classes + 5), out.shape
    # bf16 matmul operands with f32 accumulation -> loosened tolerance vs f32 ref.
    assert jnp.allclose(out, ref, rtol=5e-2, atol=5e-2), float(jnp.max(jnp.abs(out - ref)))

    # Small row_tile forces the multi-band (halo) path: 4 bands x 4 rows here.
    out_banded = jax.block_until_ready(
        scale_prediction_pallas(x, params, num_classes, row_tile=64))
    assert jnp.allclose(out_banded, ref, rtol=5e-2, atol=5e-2), \
        float(jnp.max(jnp.abs(out_banded - ref)))

    print("KERNEL_OK")
</pallas_src>

<mosaic_0001>
module attributes {stable_mosaic.version = 11 : i64} {
  func.func @kernel(%arg0: i32, %arg1: memref<1x336x4xbf16, #tpu.memory_space<vmem>>, %arg2: memref<9x4x8xbf16, #tpu.memory_space<vmem>>, %arg3: memref<1x8xf32, #tpu.memory_space<vmem>>, %arg4: memref<8x128xbf16, #tpu.memory_space<vmem>>, %arg5: memref<1x128xf32, #tpu.memory_space<vmem>>, %arg6: memref<1x288x128xf32, #tpu.memory_space<vmem>>) attributes {dimension_semantics = [#tpu.dimension_semantics<parallel>], iteration_bounds = array<i64: 2>, scalar_prefetch = 0 : i64, scratch_operands = 0 : i64, tpu.core_type = #tpu.core_type<tc>, window_params = [{transform_indices = @transform_0, window_bounds = array<i64: 1, 336, 4>}, {pipeline_mode = #tpu.pipeline_mode<synchronous>, transform_indices = @transform_1, window_bounds = array<i64: 9, 4, 8>}, {pipeline_mode = #tpu.pipeline_mode<synchronous>, transform_indices = @transform_2, window_bounds = array<i64: 1, 8>}, {pipeline_mode = #tpu.pipeline_mode<synchronous>, transform_indices = @transform_3, window_bounds = array<i64: 8, 128>}, {pipeline_mode = #tpu.pipeline_mode<synchronous>, transform_indices = @transform_4, window_bounds = array<i64: 1, 128>}, {transform_indices = @transform_5, window_bounds = array<i64: 1, 288, 128>}]} {
    %c0 = arith.constant 0 : index
    %c0_0 = arith.constant 0 : index
    %c0_1 = arith.constant 0 : index
    %0 = vector.load %arg1[%c0, %c0_0, %c0_1] : memref<1x336x4xbf16, #tpu.memory_space<vmem>>, vector<1x288x4xbf16>
    %1 = vector.shape_cast %0 : vector<1x288x4xbf16> to vector<288x4xbf16>
    %c0_2 = arith.constant 0 : index
    %c0_3 = arith.constant 0 : index
    %c0_4 = arith.constant 0 : index
    %2 = vector.load %arg2[%c0_2, %c0_3, %c0_4] : memref<9x4x8xbf16, #tpu.memory_space<vmem>>, vector<1x4x8xbf16>
    %3 = vector.shape_cast %2 : vector<1x4x8xbf16> to vector<4x8xbf16>
    %cst = arith.constant dense<0.000000e+00> : vector<288x8xf32>
    %4 = tpu.matmul %1, %3, %cst {dimension_numbers = #tpu.dot_dimension_numbers<[1], [0], [0], [1], [0, 0, 1, 1], [], []>} : vector<288x4xbf16>, vector<4x8xbf16>, vector<288x8xf32> -> vector<288x8xf32>
    %c0_5 = arith.constant 0 : index
    %c1 = arith.constant 1 : index
    %c0_6 = arith.constant 0 : index
    %5 = vector.load %arg1[%c0_5, %c1, %c0_6] : memref<1x336x4xbf16, #tpu.memory_space<vmem>>, vector<1x288x4xbf16>
    %6 = vector.shape_cast %5 : vector<1x288x4xbf16> to vector<288x4xbf16>
    %c1_7 = arith.constant 1 : index
    %c0_8 = arith.constant 0 : index
    %c0_9 = arith.constant 0 : index
    %7 = vector.load %arg2[%c1_7, %c0_8, %c0_9] : memref<9x4x8xbf16, #tpu.memory_space<vmem>>, vector<1x4x8xbf16>
    %8 = vector.shape_cast %7 : vector<1x4x8xbf16> to vector<4x8xbf16>
    %cst_10 = arith.constant dense<0.000000e+00> : vector<288x8xf32>
    %9 = tpu.matmul %6, %8, %cst_10 {dimension_numbers = #tpu.dot_dimension_numbers<[1], [0], [0], [1], [0, 0, 1, 1], [], []>} : vector<288x4xbf16>, vector<4x8xbf16>, vector<288x8xf32> -> vector<288x8xf32>
    %10 = arith.addf %4, %9 : vector<288x8xf32>
    %c0_11 = arith.constant 0 : index
    %c2 = arith.constant 2 : index
    %c0_12 = arith.constant 0 : index
    %11 = vector.load %arg1[%c0_11, %c2, %c0_12] : memref<1x336x4xbf16, #tpu.memory_space<vmem>>, vector<1x288x4xbf16>
    %12 = vector.shape_cast %11 : vector<1x288x4xbf16> to vector<288x4xbf16>
    %c2_13 = arith.constant 2 : index
    %c0_14 = arith.constant 0 : index
    %c0_15 = arith.constant 0 : index
    %13 = vector.load %arg2[%c2_13, %c0_14, %c0_15] : memref<9x4x8xbf16, #tpu.memory_space<vmem>>, vector<1x4x8xbf16>
    %14 = vector.shape_cast %13 : vector<1x4x8xbf16> to vector<4x8xbf16>
    %cst_16 = arith.constant dense<0.000000e+00> : vector<288x8xf32>
    %15 = tpu.matmul %12, %14, %cst_16 {dimension_numbers = #tpu.dot_dimension_numbers<[1], [0], [0], [1], [0, 0, 1, 1], [], []>} : vector<288x4xbf16>, vector<4x8xbf16>, vector<288x8xf32> -> vector<288x8xf32>
    %16 = arith.addf %10, %15 : vector<288x8xf32>
    %c0_17 = arith.constant 0 : index
    %c18 = arith.constant 18 : index
    %c0_18 = arith.constant 0 : index
    %17 = vector.load %arg1[%c0_17, %c18, %c0_18] : memref<1x336x4xbf16, #tpu.memory_space<vmem>>, vector<1x288x4xbf16>
    %18 = vector.shape_cast %17 : vector<1x288x4xbf16> to vector<288x4xbf16>
    %c3 = arith.constant 3 : index
    %c0_19 = arith.constant 0 : index
    %c0_20 = arith.constant 0 : index
    %19 = vector.load %arg2[%c3, %c0_19, %c0_20] : memref<9x4x8xbf16, #tpu.memory_space<vmem>>, vector<1x4x8xbf16>
    %20 = vector.shape_cast %19 : vector<1x4x8xbf16> to vector<4x8xbf16>
    %cst_21 = arith.constant dense<0.000000e+00> : vector<288x8xf32>
    %21 = tpu.matmul %18, %20, %cst_21 {dimension_numbers = #tpu.dot_dimension_numbers<[1], [0], [0], [1], [0, 0, 1, 1], [], []>} : vector<288x4xbf16>, vector<4x8xbf16>, vector<288x8xf32> -> vector<288x8xf32>
    %22 = arith.addf %16, %21 : vector<288x8xf32>
    %c0_22 = arith.constant 0 : index
    %c19 = arith.constant 19 : index
    %c0_23 = arith.constant 0 : index
    %23 = vector.load %arg1[%c0_22, %c19, %c0_23] : memref<1x336x4xbf16, #tpu.memory_space<vmem>>, vector<1x288x4xbf16>
    %24 = vector.shape_cast %23 : vector<1x288x4xbf16> to vector<288x4xbf16>
    %c4 = arith.constant 4 : index
    %c0_24 = arith.constant 0 : index
    %c0_25 = arith.constant 0 : index
    %25 = vector.load %arg2[%c4, %c0_24, %c0_25] : memref<9x4x8xbf16, #tpu.memory_space<vmem>>, vector<1x4x8xbf16>
    %26 = vector.shape_cast %25 : vector<1x4x8xbf16> to vector<4x8xbf16>
    %cst_26 = arith.constant dense<0.000000e+00> : vector<288x8xf32>
    %27 = tpu.matmul %24, %26, %cst_26 {dimension_numbers = #tpu.dot_dimension_numbers<[1], [0], [0], [1], [0, 0, 1, 1], [], []>} : vector<288x4xbf16>, vector<4x8xbf16>, vector<288x8xf32> -> vector<288x8xf32>
    %28 = arith.addf %22, %27 : vector<288x8xf32>
    %c0_27 = arith.constant 0 : index
    %c20 = arith.constant 20 : index
    %c0_28 = arith.constant 0 : index
    %29 = vector.load %arg1[%c0_27, %c20, %c0_28] : memref<1x336x4xbf16, #tpu.memory_space<vmem>>, vector<1x288x4xbf16>
    %30 = vector.shape_cast %29 : vector<1x288x4xbf16> to vector<288x4xbf16>
    %c5 = arith.constant 5 : index
    %c0_29 = arith.constant 0 : index
    %c0_30 = arith.constant 0 : index
    %31 = vector.load %arg2[%c5, %c0_29, %c0_30] : memref<9x4x8xbf16, #tpu.memory_space<vmem>>, vector<1x4x8xbf16>
    %32 = vector.shape_cast %31 : vector<1x4x8xbf16> to vector<4x8xbf16>
    %cst_31 = arith.constant dense<0.000000e+00> : vector<288x8xf32>
    %33 = tpu.matmul %30, %32, %cst_31 {dimension_numbers = #tpu.dot_dimension_numbers<[1], [0], [0], [1], [0, 0, 1, 1], [], []>} : vector<288x4xbf16>, vector<4x8xbf16>, vector<288x8xf32> -> vector<288x8xf32>
    %34 = arith.addf %28, %33 : vector<288x8xf32>
    %c0_32 = arith.constant 0 : index
    %c36 = arith.constant 36 : index
    %c0_33 = arith.constant 0 : index
    %35 = vector.load %arg1[%c0_32, %c36, %c0_33] : memref<1x336x4xbf16, #tpu.memory_space<vmem>>, vector<1x288x4xbf16>
    %36 = vector.shape_cast %35 : vector<1x288x4xbf16> to vector<288x4xbf16>
    %c6 = arith.constant 6 : index
    %c0_34 = arith.constant 0 : index
    %c0_35 = arith.constant 0 : index
    %37 = vector.load %arg2[%c6, %c0_34, %c0_35] : memref<9x4x8xbf16, #tpu.memory_space<vmem>>, vector<1x4x8xbf16>
    %38 = vector.shape_cast %37 : vector<1x4x8xbf16> to vector<4x8xbf16>
    %cst_36 = arith.constant dense<0.000000e+00> : vector<288x8xf32>
    %39 = tpu.matmul %36, %38, %cst_36 {dimension_numbers = #tpu.dot_dimension_numbers<[1], [0], [0], [1], [0, 0, 1, 1], [], []>} : vector<288x4xbf16>, vector<4x8xbf16>, vector<288x8xf32> -> vector<288x8xf32>
    %40 = arith.addf %34, %39 : vector<288x8xf32>
    %c0_37 = arith.constant 0 : index
    %c37 = arith.constant 37 : index
    %c0_38 = arith.constant 0 : index
    %41 = vector.load %arg1[%c0_37, %c37, %c0_38] : memref<1x336x4xbf16, #tpu.memory_space<vmem>>, vector<1x288x4xbf16>
    %42 = vector.shape_cast %41 : vector<1x288x4xbf16> to vector<288x4xbf16>
    %c7 = arith.constant 7 : index
    %c0_39 = arith.constant 0 : index
    %c0_40 = arith.constant 0 : index
    %43 = vector.load %arg2[%c7, %c0_39, %c0_40] : memref<9x4x8xbf16, #tpu.memory_space<vmem>>, vector<1x4x8xbf16>
    %44 = vector.shape_cast %43 : vector<1x4x8xbf16> to vector<4x8xbf16>
    %cst_41 = arith.constant dense<0.000000e+00> : vector<288x8xf32>
    %45 = tpu.matmul %42, %44, %cst_41 {dimension_numbers = #tpu.dot_dimension_numbers<[1], [0], [0], [1], [0, 0, 1, 1], [], []>} : vector<288x4xbf16>, vector<4x8xbf16>, vector<288x8xf32> -> vector<288x8xf32>
    %46 = arith.addf %40, %45 : vector<288x8xf32>
    %c0_42 = arith.constant 0 : index
    %c38 = arith.constant 38 : index
    %c0_43 = arith.constant 0 : index
    %47 = vector.load %arg1[%c0_42, %c38, %c0_43] : memref<1x336x4xbf16, #tpu.memory_space<vmem>>, vector<1x288x4xbf16>
    %48 = vector.shape_cast %47 : vector<1x288x4xbf16> to vector<288x4xbf16>
    %c8 = arith.constant 8 : index
    %c0_44 = arith.constant 0 : index
    %c0_45 = arith.constant 0 : index
    %49 = vector.load %arg2[%c8, %c0_44, %c0_45] : memref<9x4x8xbf16, #tpu.memory_space<vmem>>, vector<1x4x8xbf16>
    %50 = vector.shape_cast %49 : vector<1x4x8xbf16> to vector<4x8xbf16>
    %cst_46 = arith.constant dense<0.000000e+00> : vector<288x8xf32>
    %51 = tpu.matmul %48, %50, %cst_46 {dimension_numbers = #tpu.dot_dimension_numbers<[1], [0], [0], [1], [0, 0, 1, 1], [], []>} : vector<288x4xbf16>, vector<4x8xbf16>, vector<288x8xf32> -> vector<288x8xf32>
    %52 = arith.addf %46, %51 : vector<288x8xf32>
    %c0_47 = arith.constant 0 : index
    %c0_48 = arith.constant 0 : index
    %53 = vector.load %arg3[%c0_47, %c0_48] : memref<1x8xf32, #tpu.memory_space<vmem>>, vector<1x8xf32>
    %54 = vector.broadcast %53 : vector<1x8xf32> to vector<288x8xf32>
    %55 = arith.addf %52, %54 : vector<288x8xf32>
    %cst_49 = arith.constant 1.000000e-01 : f32
    %56 = vector.broadcast %cst_49 : f32 to vector<288x8xf32>
    %57 = arith.mulf %56, %55 : vector<288x8xf32>
    %58 = arith.maximumf %55, %57 : vector<288x8xf32>
    %59 = arith.truncf %58 : vector<288x8xf32> to vector<288x8xbf16>
    %c0_50 = arith.constant 0 : index
    %c0_51 = arith.constant 0 : index
    %60 = vector.load %arg4[%c0_50, %c0_51] : memref<8x128xbf16, #tpu.memory_space<vmem>>, vector<8x128xbf16>
    %cst_52 = arith.constant dense<0.000000e+00> : vector<288x128xf32>
    %61 = tpu.matmul %59, %60, %cst_52 {dimension_numbers = #tpu.dot_dimension_numbers<[1], [0], [0], [1], [0, 0, 1, 1], [], []>} : vector<288x8xbf16>, vector<8x128xbf16>, vector<288x128xf32> -> vector<288x128xf32>
    %c0_53 = arith.constant 0 : index
    %c0_54 = arith.constant 0 : index
    %62 = vector.load %arg5[%c0_53, %c0_54] : memref<1x128xf32, #tpu.memory_space<vmem>>, vector<1x128xf32>
    %63 = vector.broadcast %62 : vector<1x128xf32> to vector<288x128xf32>
    %64 = arith.addf %61, %63 : vector<288x128xf32>
    %c0_55 = arith.constant 0 : index
    %c0_56 = arith.constant 0 : index
    %c0_57 = arith.constant 0 : index
    %65 = vector.load %arg6[%c0_55, %c0_56, %c0_57] : memref<1x288x128xf32, #tpu.memory_space<vmem>>, vector<1x288x128xf32>
    %66 = vector.shape_cast %65 : vector<1x288x128xf32> to vector<288x128xf32>
    %67 = vector.shape_cast %64 : vector<288x128xf32> to vector<1x288x128xf32>
    tpu.vector_store %arg6[%c0_55, %c0_56, %c0_57], %67 {strides = array<i32>} : memref<1x288x128xf32, #tpu.memory_space<vmem>>, vector<1x288x128xf32>,
    return
  }
  func.func @transform_0(%arg0: i32) -> (i32, i32, i32) {
    %c0_i32 = arith.constant 0 : i32
    %c0_i32_0 = arith.constant 0 : i32
    %c0_i32_1 = arith.constant 0 : i32
    return %arg0, %c0_i32, %c0_i32_0 : i32, i32, i32
  }
  func.func @transform_1(%arg0: i32) -> (i32, i32, i32) {
    %c0_i32 = arith.constant 0 : i32
    %c0_i32_0 = arith.constant 0 : i32
    %c0_i32_1 = arith.constant 0 : i32
    %c0_i32_2 = arith.constant 0 : i32
    return %c0_i32, %c0_i32_0, %c0_i32_1 : i32, i32, i32
  }
  func.func @transform_2(%arg0: i32) -> (i32, i32) {
    %c0_i32 = arith.constant 0 : i32
    %c0_i32_0 = arith.constant 0 : i32
    %c0_i32_1 = arith.constant 0 : i32
    return %c0_i32, %c0_i32_0 : i32, i32
  }
  func.func @transform_3(%arg0: i32) -> (i32, i32) {
    %c0_i32 = arith.constant 0 : i32
    %c0_i32_0 = arith.constant 0 : i32
    %c0_i32_1 = arith.constant 0 : i32
    return %c0_i32, %c0_i32_0 : i32, i32
  }
  func.func @transform_4(%arg0: i32) -> (i32, i32) {
    %c0_i32 = arith.constant 0 : i32
    %c0_i32_0 = arith.constant 0 : i32
    %c0_i32_1 = arith.constant 0 : i32
    return %c0_i32, %c0_i32_0 : i32, i32
  }
  func.func @transform_5(%arg0: i32) -> (i32, i32, i32) {
    %c0_i32 = arith.constant 0 : i32
    %c0_i32_0 = arith.constant 0 : i32
    %c0_i32_1 = arith.constant 0 : i32
    return %arg0, %c0_i32, %c0_i32_0 : i32, i32, i32
  }
}

</mosaic_0001>

<bundles_post_ra>
// kernel: scale_prediction_pallas_nhwc.1
= control target key start
LH: loop header
LB: loop body
LE: loop exit
PB: predicated region body
PF: predicated region fallthrough
CT: control target
= control target key end

     0   :  { %s5394_s18 = smov 0   ;;  %s6430_s0 = inlined_call_operand.vmem [shape: bf16[2,336,4], index: 0, kind: input, shape index: {}]   ;;  %s6431_s1 = inlined_call_operand.vmem [shape: bf16[9,4,8], index: 1, kind: input, shape index: {}]   ;;  %s6432_s2 = inlined_call_operand.vmem [shape: f32[1,8], index: 2, kind: input, shape index: {}]   ;;  %s6433_s3 = inlined_call_operand.vmem [shape: bf16[8,128], index: 3, kind: input, shape index: {}]   ;;  %s6434_s4 = inlined_call_operand.vmem [shape: f32[1,128], index: 4, kind: input, shape index: {}]   ;;  %s6435_s5 = inlined_call_operand.vmem [shape: f32[2,288,128], index: 5, kind: output, shape index: {}]  }
   0x1 LB: > { %s4142_s19 = sadd.s32 4294967295, %s5362_s18   ;;  %p4146_p0 = scmp.ge.s32.totalorder %s5362_s18, 1  ;;  %s5362_s18 = sphi %s5394_s18, %s15_s18  }
   0x2   : > { %p187_p1 = scmp.lt.s32.totalorder %s5362_s18, 3 }
   0x4   : > { %p188_p2 = pnand %p4146_p0, %p187_p1 }
   0x6   : > { %191 = sbr.rel (%p188_p2) target bundleno = 829 (0x33d), region = 40 }
   0xd   : > { %vm563_vm0 = vcmask 1041408   ;;  %v4263_v0 = vld [vmem:[%s6431_s1 + $0x8] sm:$0x3]  ;;  %v4149_v1 = vld [vmem:[%s6431_s1 + $0x2] sm:$0x3]  ;;  %p215_p3 = scmp.lt.s32.totalorder %s4142_s19, 1 }
   0xe   : > { %5265 = vmatprep.subr.msk.bf16.mxu0 %vm563_vm0, %v4263_v0  ;;  %5261 = vmatprep.subr.msk.bf16.mxu1 %vm563_vm0, %v4149_v1  ;;  %v1945_v2 = vsel %vm563_vm0, %v4263_v0, 0  ;;  %v565_v3 = vsel %vm563_vm0, %v4149_v1, 0  ;;  %v4283_v4 = vld [vmem:[%s6431_s1 + $0xa] sm:$0x3]  ;;  %v262_v5 = vld [vmem:[%s6431_s1] sm:$0x3] }
   0xf   : > { %4746 = vmatpush3.bf16.msra.mxu0 %v1945_v2  ;;  %4594 = vmatpush3.bf16.msra.mxu1 %v565_v3  ;;  %s6448_s19 = smov (!%p215_p3, %s4142_s19), 1  ;;  %vm359_vm1 = vsmask.f32 7424  ;;  %vm508_vm2 = vcmask 31744   ;;  %v5429_v6 = vsel %vm563_vm0, %v4283_v4, 0  ;;  %v781_v12 = vsel %vm563_vm0, %v262_v5, 0 }
  0x10   : > { %5266 = vmatprep.subr.msk.bf16.mxu0 %vm563_vm0, %v4283_v4  ;;  %s5271_s28 = smul.u32 168, %s6448_s19  ;;  %5262 = vmatprep.subr.msk.bf16.mxu1 %vm563_vm0, %v262_v5  ;;  %vm1719_vm3 = vsmask.f32 6400  ;;  %v5506_v0 = vld [vmem:[%s6431_s1 + $0xc] sm:$0x3]  ;;  %vm2166_vm4 = vcmask 1045504  }
  0x11   : > { %vm966_vm5 = vcmask 1046528   ;;  %vm2919_vm6 = vsmask.f32 5376  ;;  %vm3366_vm7 = vcmask 1044480   ;;  %vm3870_vm8 = vcmask 1043456   ;;  %s5272_s23 = smul.u32 288, %s6448_s19 }
  0x12   : > { %s5426_s6 = scalar_lea.vmem %s6430_s0, %s5271_s28  ;;  %vm3815_vm9 = vcmask 64512  }
  0x13   : > { %v226_v7 = vld [vmem:[%s5426_s6] sm:$0xf]  ;;  %v5433_v8 = vld [vmem:[%s5426_s6 + $0x4] sm:$0xf]  ;;  %v5439_v10 = vld [vmem:[%s5426_s6 + $0x8] sm:$0xff]   ;;  %s6353_s28 = scalar_lea.vmem %s6435_s5, %s5272_s23 }
  0x14   : > { %v5436_v9 = vcombine.low %v226_v7, %v5433_v8  ;;  %v1274_v11 = vld [vmem:[%s5426_s6 + $0x8] sm:$0xe]  ;;  %v5444_v13 = vld [vmem:[%s5426_s6 + $0xc] sm:$0xf]  ;;  %v368_v16 = vshll.u32 %v5439_v10, 16  ;;  %v372_v17 = vshrl.u32 %v5439_v10, 16 }
  0x15   : > { %v5451_v18 = vld [vmem:[%s5426_s6 + $0x10] sm:$0xff]   ;;  %v5457_v20 = vcombine.low %v1274_v11, %v5444_v13  ;;  %v5465_v28 = vld [vmem:[%s5426_s6 + $0x18] sm:$0xff]   ;;  %v5471_v34 = vld [vmem:[%s5426_s6 + $0x20] sm:$0xff]  }
  0x16   : > { %v361_v14 = vshrl.u32 %v5436_v9, 16  ;;  %v363_v15 = vshll.u32 %v5436_v9, 16  ;;  %v5454_v19 = vld [vmem:[%s5426_s6 + $0x10] sm:$0xff]   ;;  %v370_v22 = vrot.slane %v368_v16, 1  ;;  %v1729_v23 = vshrl.u32 %v5451_v18, 16  ;;  %v5468_v33 = vld [vmem:[%s5426_s6 + $0x18] sm:$0xff]  }
  0x17   : > { %6441 = vst [vmem:[#allocation2_spill] sm:$0xff] %v5457_v20  ;;  %v1732_v24 = vshll.u32 %v5451_v18, 16  ;;  %v1721_v25 = vshrl.u32 %v5457_v20, 16  ;;  %v1724_v26 = vshll.u32 %v5457_v20, 16  ;;  %v376_v27 = vshll.u32 %v5454_v19, 16  ;;  %v5481_v47 = vld [vmem:[%s5426_s6 + $0x20] sm:$0xff]  }
  0x18   : > { %v365_v21 = vrot.slane %v363_v15, 1  ;;  %v374_v30 = vor.u32 %v372_v17, %v370_v22  ;;  %v1731_v31 = vrot.slane %v1729_v23, 1  ;;  %v1738_v38 = vshrl.u32 %v5465_v28, 16  ;;  %v5484_v48 = vld [vmem:[%s5426_s6 + $0x28] sm:$0xff]   ;;  %v5496_v58 = vld [vmem:[%s5426_s6 + $0x30] sm:$0xff]  }
  0x19   : > { %v1734_v32 = vrot.slane %v1732_v24, 2  ;;  %v1723_v35 = vrot.slane %v1721_v25, 1  ;;  %v1726_v36 = vrot.slane %v1724_v26, 2  ;;  %v378_v37 = vrot.slane %v376_v27, 1  ;;  %v5490_v53 = vld [vmem:[%s5426_s6 + $0x28] sm:$0xff]   ;;  %v5501_v63 = vld [vmem:[%s5426_s6 + $0x30] sm:$0xff]  }
  0x1a   : > { %v366_v29 = vor.u32 %v365_v21, %v361_v14  ;;  %v1741_v41 = vshll.u32 %v5465_v28, 16  ;;  %v380_v42 = vshrl.u32 %v5454_v19, 16  ;;  %v1740_v45 = vrot.slane %v1738_v38, 1  ;;  %v5518_v21 = vld [vmem:[%s5426_s6 + $0x38] sm:$0xff]  }
  0x1b   : > { %v1735_v40 = vor.u32 %v1734_v32, %v1731_v31  ;;  %v1727_v43 = vor.u32 %v1726_v36, %v1723_v35  ;;  %v379_v44 = vsel %vm359_vm1, %v374_v30, %v378_v37  ;;  %v384_v46 = vshll.u32 %v5468_v33, 16  ;;  %v5527_v31 = vld [vmem:[%s5426_s6 + $0x38] sm:$0xff]  }
  0x1c   : > { %v371_v39 = vsel %vm359_vm1, %v366_v29, %v370_v22  ;;  %v1743_v49 = vrot.slane %v1741_v41, 2  ;;  %v382_v50 = vor.u32 %v380_v42, %v378_v37  ;;  %v1747_v51 = vshrl.u32 %v5471_v34, 16  ;;  %v5538_v41 = vld [vmem:[%s5426_s6 + $0x40] sm:$0xff]  }
  0x1d   : > { %4595 = vmatprep.mubr.msk.bf16.mxu1 %vm508_vm2, %v371_v39  ;;  %v1750_v52 = vshll.u32 %v5471_v34, 16  ;;  %v1736_v54 = vsel %vm1719_vm3, %v1727_v43, %v1735_v40  ;;  %v386_v55 = vrot.slane %v384_v46, 1  ;;  %v388_v56 = vshrl.u32 %v5468_v33, 16  ;;  %v5543_v46 = vld [vmem:[%s5426_s6 + $0x40] sm:$0xff]  }
  0x1e   : > { %4596 = vmatmul.mubr.msk.bf16.vlgmr.msra.gmra.mrb[0].mxu1 %vm508_vm2, %v379_v44  ;;  %v392_v57 = vshll.u32 %v5481_v47, 16  ;;  %4747 = vmatprep.mubr.msk.bf16.mxu0 %vm508_vm2, %v1736_v54  ;;  %v1744_v59 = vor.u32 %v1743_v49, %v1740_v45  ;;  %v1749_v60 = vrot.slane %v1747_v51, 1  ;;  %v1756_v62 = vshrl.u32 %v5484_v48, 16 }
  0x1f   : > { %4632 = vmatpush3.bf16.msra.mxu1 %v781_v12  ;;  %v1752_v61 = vrot.slane %v1750_v52, 2  ;;  %v387_v1 = vsel %vm359_vm1, %v382_v50, %v386_v55  ;;  %v390_v2 = vor.u32 %v388_v56, %v386_v55  ;;  %v1759_v4 = vshll.u32 %v5484_v48, 16 }
  0x20   : > { %v394_v3 = vrot.slane %v392_v57, 1  ;;  %v1745_v5 = vsel %vm1719_vm3, %v1735_v40, %v1744_v59  ;;  %4599 = vmatprep.mubr.msk.bf16.mxu1 %vm508_vm2, %v387_v1  ;;  %v1758_v11 = vrot.slane %v1756_v62, 1  ;;  %v396_v12 = vshrl.u32 %v5481_v47, 16 }
  0x21   : > { %v1753_v7 = vor.u32 %v1752_v61, %v1749_v60  ;;  %4748 = vmatmul.mubr.msk.bf16.vlgmr.msra.gmra.mrb[0].mxu0 %vm508_vm2, %v1745_v5  ;;  %v1761_v15 = vrot.slane %v1759_v4, 2  ;;  %v400_v16 = vshll.u32 %v5490_v53, 16  ;;  %v1765_v17 = vshrl.u32 %v5496_v58, 16  ;;  %v5554_v60 = vld [vmem:[%s5426_s6 + $0x48] sm:$0xff]   ;;  %v5563_v5 = vld [vmem:[%s5426_s6 + $0x50] sm:$0xff]  }
  0x22   : > { %v395_v14 = vsel %vm359_vm1, %v390_v2, %v394_v3  ;;  %4784 = vmatpush3.bf16.msra.mxu0 %v5429_v6  ;;  %v398_v23 = vor.u32 %v396_v12, %v394_v3  ;;  %v1768_v24 = vshll.u32 %v5496_v58, 16  ;;  %v404_v25 = vshrl.u32 %v5490_v53, 16 }
  0x23   : > { %v1754_v22 = vsel %vm1719_vm3, %v1744_v59, %v1753_v7  ;;  %v1762_v26 = vor.u32 %v1761_v15, %v1758_v11  ;;  %v402_v27 = vrot.slane %v400_v16, 1  ;;  %v1767_v29 = vrot.slane %v1765_v17, 1  ;;  %5267 = vmatprep.subr.msk.bf16.mxu0 %vm563_vm0, %v5506_v0  ;;  %v5551_v59 = vld [vmem:[%s5426_s6 + $0x48] sm:$0xff]   ;;  %v5571_v17 = vld [vmem:[%s5426_s6 + $0x50] sm:$0xff]  }
  0x24   : > { %4751 = vmatprep.mubr.msk.bf16.mxu0 %vm508_vm2, %v1754_v22  ;;  %v408_v30 = vshll.u32 %v5501_v63, 16  ;;  %v1770_v6 = vrot.slane %v1768_v24, 2  ;;  %v1774_v32 = vshrl.u32 %v5518_v21, 16  ;;  %v1777_v35 = vshll.u32 %v5518_v21, 16  ;;  %v5576_v24 = vld [vmem:[%s5426_s6 + $0x58] sm:$0xff]  }
  0x25   : > { %v412_v36 = vshrl.u32 %v5501_v63, 16  ;;  %v1763_v37 = vsel %vm1719_vm3, %v1753_v7, %v1762_v26  ;;  %v403_v38 = vsel %vm359_vm1, %v398_v23, %v402_v27  ;;  %v406_v39 = vor.u32 %v404_v25, %v402_v27 }
  0x26   : > { %4600 = vmatmul.mubr.msk.bf16.gmra.mrb[4].mxu1 %vm508_vm2, %v395_v14  ;;  %v410_v40 = vrot.slane %v408_v30, 1  ;;  %v1771_v42 = vor.u32 %v1770_v6, %v1767_v29  ;;  %v1776_v43 = vrot.slane %v1774_v32, 1  ;;  %v1779_v44 = vrot.slane %v1777_v35, 2 }
  0x27   : > { %4603 = vmatprep.mubr.msk.bf16.mxu1 %vm508_vm2, %v403_v38  ;;  %v416_v45 = vshll.u32 %v5527_v31, 16  ;;  %v1783_v51 = vshrl.u32 %v5538_v41, 16  ;;  %v1786_v52 = vshll.u32 %v5538_v41, 16  ;;  %v420_v57 = vshrl.u32 %v5527_v31, 16 }
  0x28   : > { %v411_v49 = vsel %vm359_vm1, %v406_v39, %v410_v40  ;;  %v414_v50 = vor.u32 %v412_v36, %v410_v40  ;;  %v1772_v54 = vsel %vm1719_vm3, %v1762_v26, %v1771_v42  ;;  %v1780_v55 = vor.u32 %v1779_v44, %v1776_v43  ;;  %v5581_v36 = vld [vmem:[%s5426_s6 + $0x58] sm:$0xff]  }
  0x29   : > { %v418_v56 = vrot.slane %v416_v45, 1  ;;  %4752 = vmatmul.mubr.msk.bf16.gmra.mrb[4].mxu0 %vm508_vm2, %v1763_v37  ;;  %v1785_v61 = vrot.slane %v1783_v51, 1  ;;  %v1788_v62 = vrot.slane %v1786_v52, 2  ;;  %v424_v1 = vshll.u32 %v5543_v46, 16 }
  0x2a   : > { %v428_v2 = vshrl.u32 %v5543_v46, 16  ;;  %4755 = vmatprep.mubr.msk.bf16.mxu0 %vm508_vm2, %v1772_v54  ;;  %v1792_v4 = vshrl.u32 %v5551_v59, 16  ;;  %v1795_v11 = vshll.u32 %v5551_v59, 16  ;;  %v432_v12 = vshll.u32 %v5554_v60, 16 }
  0x2b   : > { %v419_v3 = vsel %vm359_vm1, %v414_v50, %v418_v56  ;;  %v1789_v7 = vor.u32 %v1788_v62, %v1785_v61  ;;  %v426_v14 = vrot.slane %v424_v1, 1  ;;  %v1801_v15 = vshrl.u32 %v5563_v5, 16 }
  0x2c   : > { %v1804_v16 = vshll.u32 %v5563_v5, 16  ;;  %v1781_v22 = vsel %vm1719_vm3, %v1771_v42, %v1780_v55  ;;  %v422_v23 = vor.u32 %v420_v57, %v418_v56  ;;  %v1794_v25 = vrot.slane %v1792_v4, 1  ;;  %v5589_v42 = vld [vmem:[%s5426_s6 + $0x60] sm:$0xff]   ;;  %v5602_v56 = vld [vmem:[%s5426_s6 + $0x68] sm:$0xff]  }
  0x2d   : > { %v1797_v26 = vrot.slane %v1795_v11, 2  ;;  %v430_v27 = vor.u32 %v428_v2, %v426_v14  ;;  %v434_v29 = vrot.slane %v432_v12, 1  ;;  %v1790_v30 = vsel %vm1719_vm3, %v1780_v55, %v1789_v7  ;;  %v5599_v55 = vld [vmem:[%s5426_s6 + $0x60] sm:$0xff]   ;;  %v5607_v4 = vld [vmem:[%s5426_s6 + $0x68] sm:$0xff]  }
  0x2e   : > { %4604 = vmatmul.mubr.msk.bf16.gmra.mrb[8].mxu1 %vm508_vm2, %v411_v49  ;;  %v1803_v6 = vrot.slane %v1801_v15, 1  ;;  %v1806_v32 = vrot.slane %v1804_v16, 2  ;;  %v440_v35 = vshll.u32 %v5571_v17, 16  ;;  %v427_v37 = vsel %vm359_vm1, %v422_v23, %v426_v14  ;;  %v5611_v15 = vld [vmem:[%s5426_s6 + $0x70] sm:$0xff]  }
  0x2f   : > { %4607 = vmatprep.mubr.msk.bf16.mxu1 %vm508_vm2, %v419_v3  ;;  %v436_v38 = vshrl.u32 %v5554_v60, 16  ;;  %v1810_v39 = vshrl.u32 %v5576_v24, 16  ;;  %v1813_v40 = vshll.u32 %v5576_v24, 16  ;;  %v1798_v43 = vor.u32 %v1797_v26, %v1794_v25 }
  0x30   : > { %v435_v44 = vsel %vm359_vm1, %v430_v27, %v434_v29  ;;  %v444_v45 = vshrl.u32 %v5571_v17, 16  ;;  %v448_v49 = vshll.u32 %v5581_v36, 16  ;;  %v1807_v50 = vor.u32 %v1806_v32, %v1803_v6 }
  0x31   : > { %4756 = vmatmul.mubr.msk.bf16.gmra.mrb[8].mxu0 %vm508_vm2, %v1781_v22  ;;  %v1819_v51 = vshrl.u32 %v5589_v42, 16  ;;  %v1822_v52 = vshll.u32 %v5589_v42, 16  ;;  %v442_v54 = vrot.slane %v440_v35, 1  ;;  %v438_v57 = vor.u32 %v436_v38, %v434_v29 }
  0x32   : > { %4759 = vmatprep.mubr.msk.bf16.mxu0 %vm508_vm2, %v1790_v30  ;;  %v1812_v61 = vrot.slane %v1810_v39, 1  ;;  %v1815_v62 = vrot.slane %v1813_v40, 2  ;;  %v1799_v1 = vsel %vm1719_vm3, %v1789_v7, %v1798_v43  ;;  %v450_v3 = vrot.slane %v448_v49, 1  ;;  %v5627_v39 = vld [vmem:[%s5426_s6 + $0x70] sm:$0xff]  }
  0x33   : > { %v446_v2 = vor.u32 %v444_v45, %v442_v54  ;;  %v1808_v11 = vsel %vm1719_vm3, %v1798_v43, %v1807_v50  ;;  %v1821_v12 = vrot.slane %v1819_v51, 1  ;;  %v1824_v14 = vrot.slane %v1822_v52, 2  ;;  %v5635_v52 = vld [vmem:[%s5426_s6 + $0x78] sm:$0xff]  }
  0x34   : > { %v456_v16 = vshll.u32 %v5599_v55, 16  ;;  %v1828_v22 = vshrl.u32 %v5602_v56, 16  ;;  %v443_v23 = vsel %vm359_vm1, %v438_v57, %v442_v54  ;;  %v452_v7 = vshrl.u32 %v5581_v36, 16  ;;  %6442 = vst [vmem:[#allocation3_spill] sm:$0xff] %v5635_v52 }
  0x35   : > { %v1831_v25 = vshll.u32 %v5602_v56, 16  ;;  %v1816_v26 = vor.u32 %v1815_v62, %v1812_v61  ;;  %v451_v27 = vsel %vm359_vm1, %v446_v2, %v450_v3  ;;  %v460_v29 = vshrl.u32 %v5599_v55, 16  ;;  %v5639_v62 = vld [vmem:[%s5426_s6 + $0x80] sm:$0xff]  }
  0x36   : > { %4608 = vmatmul.mubr.msk.bf16.gmra.mrb[12].mxu1 %vm508_vm2, %v427_v37  ;;  %v464_v30 = vshll.u32 %v5607_v4, 16  ;;  %v1825_v6 = vor.u32 %v1824_v14, %v1821_v12  ;;  %v1837_v32 = vshrl.u32 %v5611_v15, 16  ;;  %v1840_v35 = vshll.u32 %v5611_v15, 16 }
  0x37   : > { %4611 = vmatprep.mubr.msk.bf16.mxu1 %vm508_vm2, %v435_v44  ;;  %v458_v37 = vrot.slane %v456_v16, 1  ;;  %v1830_v38 = vrot.slane %v1828_v22, 1  ;;  %v454_v40 = vor.u32 %v452_v7, %v450_v3  ;;  %v1833_v43 = vrot.slane %v1831_v25, 2  ;;  %v5631_v44 = vld [vmem:[%s5426_s6 + $0x78] sm:$0xff]  }
  0x38   : > { %v1817_v45 = vsel %vm1719_vm3, %v1807_v50, %v1816_v26  ;;  %v466_v51 = vrot.slane %v464_v30, 1  ;;  %v1826_v54 = vsel %vm1719_vm3, %v1816_v26, %v1825_v6  ;;  %v1839_v57 = vrot.slane %v1837_v32, 1  ;;  %v5660_v32 = vld [vmem:[%s5426_s6 + $0x88] sm:$0xff]  }
  0x39   : > { %4760 = vmatmul.mubr.msk.bf16.gmra.mrb[12].mxu0 %vm508_vm2, %v1799_v1  ;;  %v462_v49 = vor.u32 %v460_v29, %v458_v37  ;;  %v1842_v61 = vrot.slane %v1840_v35, 2  ;;  %v472_v1 = vshll.u32 %v5627_v39, 16  ;;  %v459_v2 = vsel %vm359_vm1, %v454_v40, %v458_v37 }
  0x3a   : > { %4763 = vmatprep.mubr.msk.bf16.mxu0 %vm508_vm2, %v1808_v11  ;;  %v1834_v3 = vor.u32 %v1833_v43, %v1830_v38  ;;  %v468_v50 = vshrl.u32 %v5607_v4, 16  ;;  %v1846_v11 = vshrl.u32 %v5631_v44, 16  ;;  %v1849_v14 = vshll.u32 %v5631_v44, 16  ;;  %v5663_v43 = vld [vmem:[%s5426_s6 + $0x88] sm:$0xff]  }
  0x3b   : > { %v467_v12 = vsel %vm359_vm1, %v462_v49, %v466_v51  ;;  %v476_v16 = vshrl.u32 %v5627_v39, 16  ;;  %v480_v22 = vshll.u32 %v5635_v52, 16  ;;  %v1855_v7 = vshrl.u32 %v5639_v62, 16 }
  0x3c   : > { %v1858_v25 = vshll.u32 %v5639_v62, 16  ;;  %v474_v26 = vrot.slane %v472_v1, 1  ;;  %v1835_v29 = vsel %vm1719_vm3, %v1825_v6, %v1834_v3  ;;  %v470_v30 = vor.u32 %v468_v50, %v466_v51 }
  0x3d   : > { %v1848_v35 = vrot.slane %v1846_v11, 1  ;;  %v1851_v37 = vrot.slane %v1849_v14, 2  ;;  %v482_v40 = vrot.slane %v480_v22, 1  ;;  %v484_v1 = vshrl.u32 %v5635_v52, 16 }
  0x3e   : > { %4612 = vmatmul.mubr.msk.bf16.gmra.mrb[16].mxu1 %vm508_vm2, %v443_v23  ;;  %v1843_v23 = vor.u32 %v1842_v61, %v1839_v57  ;;  %v478_v38 = vor.u32 %v476_v16, %v474_v26  ;;  %v1860_v6 = vrot.slane %v1858_v25, 2  ;;  %v5672_v57 = vld [vmem:[%s5426_s6 + $0x90] sm:$0xff]   ;;  %v475_v61 = vsel %vm359_vm1, %v470_v30, %v474_v26 }
  0x3f   : > { %4615 = vmatprep.mubr.msk.bf16.mxu1 %vm508_vm2, %v451_v27  ;;  %v5655_v27 = vld [vmem:[%s5426_s6 + $0x80] sm:$0xff]   ;;  %v1852_v50 = vor.u32 %v1851_v37, %v1848_v35  ;;  %v496_v14 = vshll.u32 %v5663_v43, 16  ;;  %v1873_v22 = vshrl.u32 %v5672_v57, 16  ;;  %v5689_v25 = vld [vmem:[%s5426_s6 + $0x90] ss:$0 sps:$4 sm:$0x11]   ;;  %v486_v30 = vor.u32 %v484_v1, %v482_v40 }
  0x40   : > { %6443 = vst [vmem:[#allocation4_spill] sm:$0xff] %v5655_v27  ;;  %v1844_v49 = vsel %vm1719_vm3, %v1834_v3, %v1843_v23  ;;  %v488_v51 = vshll.u32 %v5655_v27, 16  ;;  %v1867_v3 = vshll.u32 %v5660_v32, 16  ;;  %v483_v11 = vsel %vm359_vm1, %v478_v38, %v482_v40 }
  0x41   : > { %4764 = vmatmul.mubr.msk.bf16.gmra.mrb[16].mxu0 %vm508_vm2, %v1817_v45  ;;  %v5668_v45 = vld [vmem:[%s6431_s1 + $0x4] sm:$0x3]  ;;  %v1853_v38 = vsel %vm1719_vm3, %v1843_v23, %v1852_v50  ;;  %v498_v20 = vrot.slane %v496_v14, 1  ;;  %v500_v52 = vshrl.u32 %v5663_v43, 16  ;;  %v504_v40 = vshll.u32 %v5689_v25, 16 }
  0x42   : > { %4767 = vmatprep.mubr.msk.bf16.mxu0 %vm508_vm2, %v1826_v54  ;;  %v1857_v54 = vrot.slane %v1855_v7, 1  ;;  %5263 = vmatprep.subr.msk.bf16.mxu1 %vm563_vm0, %v5668_v45  ;;  %v1876_v7 = vshll.u32 %v5672_v57, 16  ;;  %v490_v26 = vrot.slane %v488_v51, 1  ;;  %v1869_v37 = vrot.slane %v1867_v3, 2 }
  0x43   : > { %v2200_v1 = vrot.slane %v5672_v57, 2 }
  0x44   : > { %v1861_v16 = vor.u32 %v1860_v6, %v1857_v54  ;;  %v1875_v6 = vrot.slane %v1873_v22, 1  ;;  %v491_v51 = vsel %vm359_vm1, %v486_v30, %v490_v26  ;;  %v502_v22 = vor.u32 %v500_v52, %v498_v20 }
  0x46   : > { %4616 = vmatmul.mubr.msk.bf16.gmra.mrb[20].mxu1 %vm508_vm2, %v459_v2  ;;  %v1864_v2 = vshrl.u32 %v5660_v32, 16  ;;  %v1862_v54 = vsel %vm1719_vm3, %v1852_v50, %v1861_v16 }
  0x47   : > { %4619 = vmatprep.mubr.msk.bf16.mxu1 %vm508_vm2, %v467_v12  ;;  %v492_v12 = vshrl.u32 %v5655_v27, 16  ;;  %v1878_v27 = vrot.slane %v1876_v7, 2  ;;  %v506_v7 = vrot.slane %v504_v40, 1  ;;  %v2180_v40 = vrot.slane %v5538_v41, 2 }
  0x48   : > { %v1866_v35 = vrot.slane %v1864_v2, 1 }
  0x49   : > { %4768 = vmatmul.mubr.msk.bf16.gmra.mrb[20].mxu0 %vm508_vm2, %v1835_v29  ;;  %v5318_v29 = vld [vmem:[%s5426_s6 + $0x98] ss:$0 sps:$4 sm:$0x33]  }
  0x4a   : > { %4771 = vmatprep.mubr.msk.bf16.mxu0 %vm508_vm2, %v1844_v49  ;;  %v494_v49 = vor.u32 %v492_v12, %v490_v26  ;;  %v1882_v2 = vshrl.u32 %v5318_v29, 16  ;;  %v1885_v3 = vshll.u32 %v5318_v29, 16  ;;  %v2202_v50 = vrot.slane %v5318_v29, 2  ;;  %v2160_v12 = vld [vmem:[%s5426_s6 + $0x8] sm:$0xc] }
  0x4c   : > { %v499_v23 = vsel %vm359_vm1, %v494_v49, %v498_v20  ;;  %v5708_v14 = vsel %vm2166_vm4, %v2200_v1, %v2202_v50  ;;  %v1884_v30 = vrot.slane %v1882_v2, 1 }
  0x4e   : > { %4620 = vmatmul.mubr.msk.bf16.gmra.mrb[24].mxu1 %vm508_vm2, %v475_v61  ;;  %v1870_v61 = vor.u32 %v1869_v37, %v1866_v35  ;;  %v1887_v35 = vrot.slane %v1885_v3, 2  ;;  %v507_v37 = vsel %vm359_vm1, %v502_v22, %v506_v7  ;;  %v2184_v3 = vrot.slane %v5563_v5, 2 }
  0x4f   : > { %4623 = vmatprep.mubr.msk.bf16.mxu1 %vm508_vm2, %v483_v11  ;;  %v1879_v11 = vor.u32 %v1878_v27, %v1875_v6  ;;  %v4284_v27 = vcombine.low %v2160_v12, %v5444_v13  ;;  %v2170_v13 = vrot.slane %v5465_v28, 2  ;;  %v2698_v6 = vsel %vm563_vm0, %v5506_v0, 0  ;;  %v5740_v28 = vld [vmem:[%s6431_s1 + $0xe] sm:$0x3] }
  0x50   : > { %v1871_v26 = vsel %vm1719_vm3, %v1861_v16, %v1870_v61  ;;  %v1059_v16 = vsel %vm563_vm0, %v5668_v45, 0  ;;  %v2176_v45 = vrot.slane %v5496_v58, 2  ;;  %v2178_v58 = vrot.slane %v5518_v21, 2 }
  0x51   : > { %4772 = vmatmul.mubr.msk.bf16.gmra.mrb[24].mxu0 %vm508_vm2, %v1853_v38  ;;  %v1880_v29 = vsel %vm1719_vm3, %v1870_v61, %v1879_v11  ;;  %v1888_v38 = vor.u32 %v1887_v35, %v1884_v30  ;;  %v2167_v49 = vrot.slane %v4284_v27, 2  ;;  %v2182_v21 = vrot.slane %v5551_v59, 2  ;;  %v960_v35 = vld [vmem:[%s5426_s6] sm:$0xe] }
  0x52   : > { %4775 = vmatprep.mubr.msk.bf16.mxu0 %vm508_vm2, %v1862_v54  ;;  %v2168_v54 = vrot.slane %v5451_v18, 2  ;;  %v2172_v18 = vrot.slane %v5471_v34, 2  ;;  %v2174_v34 = vrot.slane %v5484_v48, 2  ;;  %v5758_v48 = vld [vmem:[%s6431_s1 + $0x6] sm:$0x3]  ;;  %v2181_v2 = vsel %vm2166_vm4, %v2178_v58, %v2180_v40 }
  0x53   : > { %v1889_v20 = vsel %vm1719_vm3, %v1879_v11, %v1888_v38  ;;  %v2183_v41 = vsel %vm2166_vm4, %v2180_v40, %v2182_v21  ;;  %v2185_v50 = vsel %vm2166_vm4, %v2182_v21, %v2184_v3  ;;  %v2186_v11 = vrot.slane %v5576_v24, 2  ;;  %v2474_v38 = vld [vmem:[%s5426_s6 + $0x10] sm:$0xc] }
  0x54   : > { %v2169_v52 = vsel %vm2166_vm4, %v2167_v49, %v2168_v54  ;;  %v2175_v0 = vsel %vm2166_vm4, %v2172_v18, %v2174_v34  ;;  %v2177_v61 = vsel %vm2166_vm4, %v2174_v34, %v2176_v45  ;;  %v2188_v59 = vrot.slane %v5589_v42, 2  ;;  %v5820_v49 = vld [vmem:[%s5426_s6 + $0x14] sm:$0xf] }
  0x55   : > { %v2187_v5 = vsel %vm2166_vm4, %v2184_v3, %v2186_v11  ;;  %v2190_v22 = vrot.slane %v5602_v56, 2  ;;  %v2192_v24 = vrot.slane %v5611_v15, 2  ;;  %v2194_v56 = vrot.slane %v5631_v44, 2 }
  0x56   : > { %4624 = vmatmul.mubr.msk.bf16.gmra.mrb[28].mxu1 %vm508_vm2, %v491_v51  ;;  %v2173_v51 = vsel %vm2166_vm4, %v2170_v13, %v2172_v18  ;;  %v2189_v12 = vsel %vm2166_vm4, %v2186_v11, %v2188_v59  ;;  %v2196_v15 = vrot.slane %v5639_v62, 2  ;;  %v4206_v27 = vcombine.low %v960_v35, %v5433_v8  ;;  %v5833_v18 = vld [vmem:[%s5426_s6 + $0x18] sm:$0xff]  }
  0x57   : > { %4627 = vmatprep.mubr.msk.bf16.mxu1 %vm508_vm2, %v499_v23  ;;  %v2179_v23 = vsel %vm2166_vm4, %v2176_v45, %v2178_v58  ;;  %v2191_v42 = vsel %vm2166_vm4, %v2188_v59, %v2190_v22  ;;  %v2193_v7 = vsel %vm2166_vm4, %v2190_v22, %v2192_v24  ;;  %v972_v34 = vrot.slane %v5468_v33, 1 }
  0x58   : > { %v2197_v30 = vsel %vm2166_vm4, %v2194_v56, %v2196_v15  ;;  %v1498_v40 = vsel %vm563_vm0, %v5758_v48, 0  ;;  %v976_v21 = vrot.slane %v5490_v53, 1  ;;  %v3145_v3 = vsel %vm563_vm0, %v5740_v28, 0 }
  0x59   : > { %4776 = vmatmul.mubr.msk.bf16.gmra.mrb[28].mxu0 %vm508_vm2, %v1871_v26  ;;  %v2195_v26 = vsel %vm2166_vm4, %v2192_v24, %v2194_v56  ;;  %v978_v59 = vrot.slane %v5501_v63, 1  ;;  %v980_v22 = vrot.slane %v5527_v31, 1  ;;  %v984_v35 = vrot.slane %v5554_v60, 1 }
  0x5a   : > { %4779 = vmatprep.mubr.msk.bf16.mxu0 %vm508_vm2, %v1880_v29  ;;  %v2198_v29 = vrot.slane %v5660_v32, 2 }
  0x5b   : > { %v981_v56 = vsel %vm966_vm5, %v978_v59, %v980_v22 }
  0x5c   : > { %v2201_v8 = vsel %vm2166_vm4, %v2198_v29, %v2200_v1  ;;  %v970_v1 = vrot.slane %v5454_v19, 1 }
  0x5e   : > { %4628 = vmatmul.mubr.msk.bf16.gmra.mrb[32].mxu1 %vm508_vm2, %v507_v37  ;;  %v6444_v37 = vld [vmem:[#allocation3_spill] sm:$0xff] }
  0x5f   : > { %4633 = vmatprep.mubr.msk.bf16.mxu1 %vm508_vm2, %v5436_v9  ;;  %v2171_v9 = vsel %vm2166_vm4, %v2168_v54, %v2170_v13  ;;  %v6445_v54 = vld [vmem:[#allocation4_spill] sm:$0xff]  ;;  %v968_v13 = vrot.slane %v5439_v10, 1 }
  0x61   : > { %4780 = vmatmul.mubr.msk.bf16.gmra.mrb[32].mxu0 %vm508_vm2, %v1889_v20  ;;  %v2199_v20 = vsel %vm2166_vm4, %v2196_v15, %v2198_v29 }
  0x62   : > { %4785 = vmatprep.mubr.msk.bf16.mxu0 %vm508_vm2, %v2169_v52  ;;  %v967_v52 = vrot.slane %v4206_v27, 1  ;;  %v5916_v27 = vld [vmem:[%s5426_s6 + $0x58] sm:$0xff]  }
  0x66   : > { %4634 = vmatmul.mubr.msk.bf16.vlgmr.msra.gmra.mrb[0].mxu1 %vm508_vm2, %v5439_v10  ;;  %v2607_v10 = vrot.slane %v5833_v18, 2 }
  0x67   : > { %4637 = vmatprep.mubr.msk.bf16.mxu1 %vm508_vm2, %v5454_v19  ;;  %4670 = vmatpush3.bf16.msra.mxu1 %v1059_v16  ;;  %v5830_v16 = vcombine.low %v2474_v38, %v5820_v49  ;;  %v973_v19 = vsel %vm966_vm5, %v970_v1, %v972_v34 }
  0x68   : > { %5264 = vmatprep.subr.msk.bf16.mxu1 %vm563_vm0, %v5758_v48 }
  0x69   : > { %4786 = vmatmul.mubr.msk.bf16.vlgmr.msra.gmra.mrb[0].mxu0 %vm508_vm2, %v2171_v9  ;;  %v969_v9 = vsel %vm966_vm5, %v967_v52, %v968_v13  ;;  %v2623_v52 = vrot.slane %v5916_v27, 2 }
  0x6a   : > { %4822 = vmatpush3.bf16.msra.mxu0 %v2698_v6  ;;  %4789 = vmatprep.mubr.msk.bf16.mxu0 %vm508_vm2, %v2173_v51  ;;  %v2606_v6 = vrot.slane %v5830_v16, 2  ;;  %v5845_v51 = vld [vmem:[%s5426_s6 + $0x20] sm:$0xff]  }
  0x6b   : > { %5268 = vmatprep.subr.msk.bf16.mxu0 %vm563_vm0, %v5740_v28  ;;  %v2609_v58 = vrot.slane %v5845_v51, 2 }
  0x6c   : > { %v2608_v45 = vsel %vm2166_vm4, %v2606_v6, %v2607_v10 }
  0x6e   : > { %4638 = vmatmul.mubr.msk.bf16.gmra.mrb[4].mxu1 %vm508_vm2, %v5468_v33 }
  0x6f   : > { %4641 = vmatprep.mubr.msk.bf16.mxu1 %vm508_vm2, %v5481_v47 }
  0x71   : > { %4790 = vmatmul.mubr.msk.bf16.gmra.mrb[4].mxu0 %vm508_vm2, %v2175_v0  ;;  %v5850_v0 = vld [vmem:[%s5426_s6 + $0x28] sm:$0xff]  }
  0x72   : > { %4793 = vmatprep.mubr.msk.bf16.mxu0 %vm508_vm2, %v2177_v61  ;;  %v971_v61 = vsel %vm966_vm5, %v968_v13, %v970_v1  ;;  %v2611_v33 = vrot.slane %v5850_v0, 2 }
  0x74   : > { %v2612_v48 = vsel %vm2166_vm4, %v2609_v58, %v2611_v33 }
  0x76   : > { %4642 = vmatmul.mubr.msk.bf16.gmra.mrb[8].mxu1 %vm508_vm2, %v5490_v53 }
  0x77   : > { %4645 = vmatprep.mubr.msk.bf16.mxu1 %vm508_vm2, %v5501_v63 }
  0x79   : > { %4794 = vmatmul.mubr.msk.bf16.gmra.mrb[8].mxu0 %vm508_vm2, %v2179_v23  ;;  %v2610_v23 = vsel %vm2166_vm4, %v2607_v10, %v2609_v58  ;;  %v5934_v10 = vld [vmem:[%s5426_s6 + $0x68] sm:$0xff]   ;;  %v5947_v58 = vld [vmem:[%s5426_s6 + $0x70] sm:$0xff]  }
  0x7a   : > { %4797 = vmatprep.mubr.msk.bf16.mxu0 %vm508_vm2, %v2181_v2  ;;  %v5866_v2 = vld [vmem:[%s5426_s6 + $0x30] sm:$0xff]  }
  0x7b   : > { %v2613_v53 = vrot.slane %v5866_v2, 2 }
  0x7e   : > { %4646 = vmatmul.mubr.msk.bf16.gmra.mrb[12].mxu1 %vm508_vm2, %v5527_v31  ;;  %v982_v31 = vrot.slane %v5543_v46, 1 }
  0x7f   : > { %4649 = vmatprep.mubr.msk.bf16.mxu1 %vm508_vm2, %v5543_v46 }
  0x80   : > { %v983_v38 = vsel %vm966_vm5, %v980_v22, %v982_v31 }
  0x81   : > { %4798 = vmatmul.mubr.msk.bf16.gmra.mrb[12].mxu0 %vm508_vm2, %v2183_v41  ;;  %v5873_v41 = vld [vmem:[%s5426_s6 + $0x38] sm:$0xff]  }
  0x82   : > { %4801 = vmatprep.mubr.msk.bf16.mxu0 %vm508_vm2, %v2185_v50  ;;  %v5878_v50 = vld [vmem:[%s6431_s1 + $0x10] sm:$0x3]  ;;  %v2615_v11 = vrot.slane %v5873_v41, 2 }
  0x84   : > { %v2616_v24 = vsel %vm2166_vm4, %v2613_v53, %v2615_v11 }
  0x86   : > { %4650 = vmatmul.mubr.msk.bf16.gmra.mrb[16].mxu1 %vm508_vm2, %v5554_v60  ;;  %v986_v60 = vrot.slane %v5571_v17, 1 }
  0x87   : > { %4653 = vmatprep.mubr.msk.bf16.mxu1 %vm508_vm2, %v5571_v17 }
  0x88   : > { %v987_v1 = vsel %vm966_vm5, %v984_v35, %v986_v60 }
  0x89   : > { %4802 = vmatmul.mubr.msk.bf16.gmra.mrb[16].mxu0 %vm508_vm2, %v2187_v5  ;;  %v2614_v5 = vsel %vm2166_vm4, %v2611_v33, %v2613_v53  ;;  %v5952_v33 = vld [vmem:[%s5426_s6 + $0x78] sm:$0xff]  }
  0x8a   : > { %4805 = vmatprep.mubr.msk.bf16.mxu0 %vm508_vm2, %v2189_v12  ;;  %v5893_v12 = vld [vmem:[%s5426_s6 + $0x40] sm:$0xff]  }
  0x8b   : > { %v2617_v63 = vrot.slane %v5893_v12, 2 }
  0x8e   : > { %4654 = vmatmul.mubr.msk.bf16.gmra.mrb[20].mxu1 %vm508_vm2, %v5581_v36 }
  0x8f   : > { %4657 = vmatprep.mubr.msk.bf16.mxu1 %vm508_vm2, %v5599_v55 }
  0x91   : > { %4806 = vmatmul.mubr.msk.bf16.gmra.mrb[20].mxu0 %vm508_vm2, %v2191_v42  ;;  %v5898_v42 = vld [vmem:[%s5426_s6 + $0x48] sm:$0xff]  }
  0x92   : > { %4809 = vmatprep.mubr.msk.bf16.mxu0 %vm508_vm2, %v2193_v7  ;;  %v979_v7 = vsel %vm966_vm5, %v976_v21, %v978_v59  ;;  %v2619_v15 = vrot.slane %v5898_v42, 2 }
  0x94   : > { %v2620_v29 = vsel %vm2166_vm4, %v2617_v63, %v2619_v15 }
  0x96   : > { %4658 = vmatmul.mubr.msk.bf16.gmra.mrb[24].mxu1 %vm508_vm2, %v5607_v4 }
  0x97   : > { %4661 = vmatprep.mubr.msk.bf16.mxu1 %vm508_vm2, %v5627_v39 }
  0x99   : > { %4810 = vmatmul.mubr.msk.bf16.gmra.mrb[24].mxu0 %vm508_vm2, %v2195_v26  ;;  %v2618_v26 = vsel %vm2166_vm4, %v2615_v11, %v2617_v63  ;;  %v5987_v63 = vld [vmem:[%s5426_s6 + $0x98] sm:$0xff]  }
  0x9a   : > { %4813 = vmatprep.mubr.msk.bf16.mxu0 %vm508_vm2, %v2197_v30  ;;  %v5911_v30 = vld [vmem:[%s5426_s6 + $0x50] sm:$0xff]  }
  0x9b   : > { %v2621_v46 = vrot.slane %v5911_v30, 2 }
  0x9d   : > { %v2622_v13 = vsel %vm2166_vm4, %v2619_v15, %v2621_v46  ;;  %v2624_v6 = vsel %vm2166_vm4, %v2621_v46, %v2623_v52  ;;  %v1002_v46 = vrot.slane %v5689_v25, 1 }
  0x9e   : > { %4662 = vmatmul.mubr.msk.bf16.gmra.mrb[28].mxu1 %vm508_vm2, %v6444_v37 }
  0x9f   : > { %4665 = vmatprep.mubr.msk.bf16.mxu1 %vm508_vm2, %v6445_v54 }
  0xa1   : > { %4814 = vmatmul.mubr.msk.bf16.gmra.mrb[28].mxu0 %vm508_vm2, %v2199_v20  ;;  %v985_v20 = vsel %vm966_vm5, %v982_v31, %v984_v35  ;;  %v2924_v35 = vshll.u32 %v5830_v16, 16 }
  0xa2   : > { %4817 = vmatprep.mubr.msk.bf16.mxu0 %vm508_vm2, %v2201_v8  ;;  %v5929_v8 = vld [vmem:[%s5426_s6 + $0x60] sm:$0xff]  }
  0xa3   : > { %v2625_v17 = vrot.slane %v5929_v8, 2 }
  0xa6   : > { %4666 = vmatmul.mubr.msk.bf16.gmra.mrb[32].mxu1 %vm508_vm2, %v5663_v43 }
  0xa7   : > { %4671 = vmatprep.mubr.msk.bf16.mxu1 %vm508_vm2, %v969_v9  ;;  %v988_v9 = vrot.slane %v5581_v36, 1  ;;  %v990_v36 = vrot.slane %v5599_v55, 1  ;;  %v2629_v55 = vrot.slane %v5947_v58, 2 }
  0xa9   : > { %4818 = vmatmul.mubr.msk.bf16.gmra.mrb[32].mxu0 %vm508_vm2, %v5708_v14  ;;  %v974_v14 = vrot.slane %v5481_v47, 1 }
  0xaa   : > { %4823 = vmatprep.mubr.msk.bf16.mxu0 %vm508_vm2, %v2608_v45  ;;  %v2627_v45 = vrot.slane %v5934_v10, 2 }
  0xab   : > { %v975_v47 = vsel %vm966_vm5, %v972_v34, %v974_v14  ;;  %v977_v28 = vsel %vm966_vm5, %v974_v14, %v976_v21  ;;  %v989_v34 = vsel %vm966_vm5, %v986_v60, %v988_v9  ;;  %v991_v14 = vsel %vm966_vm5, %v988_v9, %v990_v36  ;;  %v5339_v60 = vld [vmem:[%s5426_s6 + $0xa0] ss:$0 sps:$4 sm:$0x33]  }
  0xac   : > { %v2631_v21 = vrot.slane %v5952_v33, 2  ;;  %v2641_v25 = vrot.slane %v5339_v60, 2  ;;  %v5347_v60 = vld [vmem:[%s5426_s6 + $0x30] sm:$0xff]  }
  0xae   : > { %4672 = vmatmul.mubr.msk.bf16.vlgmr.msra.gmra.mrb[0].mxu1 %vm508_vm2, %v971_v61  ;;  %v2626_v61 = vsel %vm2166_vm4, %v2623_v52, %v2625_v17  ;;  %v2632_v53 = vsel %vm2166_vm4, %v2629_v55, %v2631_v21 }
  0xaf   : > { %4675 = vmatprep.mubr.msk.bf16.mxu1 %vm508_vm2, %v973_v19  ;;  %4708 = vmatpush3.bf16.msra.mxu1 %v1498_v40  ;;  %v992_v19 = vrot.slane %v5607_v4, 1  ;;  %v2628_v40 = vsel %vm2166_vm4, %v2625_v17, %v2627_v45  ;;  %v994_v4 = vrot.slane %v5627_v39, 1  ;;  %v2926_v17 = vrot.slane %v2924_v35, 3 }
  0xb0   : > { %v2968_v35 = vshll.u32 %v5873_v41, 16 }
  0xb1   : > { %4824 = vmatmul.mubr.msk.bf16.vlgmr.msra.gmra.mrb[0].mxu0 %vm508_vm2, %v2610_v23  ;;  %v993_v23 = vsel %vm966_vm5, %v990_v36, %v992_v19  ;;  %v995_v11 = vsel %vm966_vm5, %v992_v19, %v994_v4  ;;  %v2938_v19 = vshrl.u32 %v5845_v51, 16 }
  0xb2   : > { %4860 = vmatpush3.bf16.msra.mxu0 %v3145_v3  ;;  %4827 = vmatprep.mubr.msk.bf16.mxu0 %vm508_vm2, %v2612_v48  ;;  %v2630_v3 = vsel %vm2166_vm4, %v2627_v45, %v2629_v55  ;;  %v5965_v48 = vld [vmem:[%s5426_s6 + $0x80] sm:$0xff]  }
  0xb3   : > { %5269 = vmatprep.subr.msk.bf16.mxu0 %vm563_vm0, %v5878_v50  ;;  %v2633_v39 = vrot.slane %v5965_v48, 2 }
  0xb5   : > { %v2634_v22 = vsel %vm2166_vm4, %v2631_v21, %v2633_v39  ;;  %v2950_v21 = vshll.u32 %v5850_v0, 16 }
  0xb6   : > { %4676 = vmatmul.mubr.msk.bf16.gmra.mrb[4].mxu1 %vm508_vm2, %v975_v47  ;;  %v996_v47 = vrot.slane %v6444_v37, 1  ;;  %v998_v37 = vrot.slane %v6445_v54, 1 }
  0xb7   : > { %4679 = vmatprep.mubr.msk.bf16.mxu1 %vm508_vm2, %v977_v28  ;;  %v5970_v28 = vld [vmem:[%s5426_s6 + $0x88] sm:$0xff]  }
  0xb8   : > { %v997_v59 = vsel %vm966_vm5, %v994_v4, %v996_v47  ;;  %v999_v15 = vsel %vm966_vm5, %v996_v47, %v998_v37  ;;  %v5344_v4 = vld [vmem:[%s5426_s6 + $0x18] sm:$0xff]  }
  0xb9   : > { %4828 = vmatmul.mubr.msk.bf16.gmra.mrb[4].mxu0 %vm508_vm2, %v2614_v5  ;;  %v2635_v5 = vrot.slane %v5970_v28, 2 }
  0xba   : > { %4831 = vmatprep.mubr.msk.bf16.mxu0 %vm508_vm2, %v2616_v24  ;;  %v5983_v24 = vld [vmem:[%s5426_s6 + $0x90] sm:$0xff]  }
  0xbb   : > { %v2637_v54 = vrot.slane %v5983_v24, 2 }
  0xbe   : > { %4680 = vmatmul.mubr.msk.bf16.gmra.mrb[8].mxu1 %vm508_vm2, %v979_v7  ;;  %v1000_v7 = vrot.slane %v5663_v43, 1  ;;  %v2921_v43 = vshrl.u32 %v5830_v16, 16 }
  0xbf   : > { %4683 = vmatprep.mubr.msk.bf16.mxu1 %vm508_vm2, %v981_v56  ;;  %v2636_v56 = vsel %vm2166_vm4, %v2633_v39, %v2635_v5  ;;  %v5345_v39 = vld [vmem:[%s5426_s6 + $0x20] sm:$0xff]  }
  0xc0   : > { %v1001_v31 = vsel %vm966_vm5, %v998_v37, %v1000_v7  ;;  %v2923_v16 = vrot.slane %v2921_v43, 2  ;;  %v1003_v36 = vsel %vm966_vm5, %v1000_v7, %v1002_v46  ;;  %v2965_v43 = vshrl.u32 %v5873_v41, 16 }
  0xc1   : > { %4832 = vmatmul.mubr.msk.bf16.gmra.mrb[8].mxu0 %vm508_vm2, %v2618_v26  ;;  %v2639_v26 = vrot.slane %v5987_v63, 2 }
  0xc2   : > { %4835 = vmatprep.mubr.msk.bf16.mxu0 %vm508_vm2, %v2620_v29  ;;  %v2929_v29 = vshrl.u32 %v5833_v18, 16 }
  0xc3   : > { %v2640_v52 = vsel %vm2166_vm4, %v2637_v54, %v2639_v26  ;;  %v2642_v47 = vsel %vm2166_vm4, %v2639_v26, %v2641_v25 }
  0xc6   : > { %4684 = vmatmul.mubr.msk.bf16.gmra.mrb[12].mxu1 %vm508_vm2, %v983_v38  ;;  %v2932_v38 = vshll.u32 %v5833_v18, 16 }
  0xc7   : > { %4687 = vmatprep.mubr.msk.bf16.mxu1 %vm508_vm2, %v985_v20  ;;  %v2638_v20 = vsel %vm2166_vm4, %v2635_v5, %v2637_v54  ;;  %v2956_v54 = vshrl.u32 %v5866_v2, 16 }
  0xc8   : > { %v2934_v45 = vrot.slane %v2932_v38, 3 }
  0xc9   : > { %4836 = vmatmul.mubr.msk.bf16.gmra.mrb[12].mxu0 %vm508_vm2, %v2622_v13  ;;  %v6446_v13 = vld [vmem:[#allocation2_spill] sm:$0xff] }
  0xca   : > { %4839 = vmatprep.mubr.msk.bf16.mxu0 %vm508_vm2, %v2624_v6  ;;  %v1406_v9 = vrot.slane %v6446_v13, 1  ;;  %v5343_v6 = vld [vmem:[%s5426_s6 + $0x10] sm:$0xff]   ;;  %v1415_v13 = vrot.slane %v5347_v60, 1 }
  0xce   : > { %4688 = vmatmul.mubr.msk.bf16.gmra.mrb[16].mxu1 %vm508_vm2, %v987_v1  ;;  %v1407_v1 = vrot.slane %v5343_v6, 1 }
  0xcf   : > { %4691 = vmatprep.mubr.msk.bf16.mxu1 %vm508_vm2, %v989_v34  ;;  %v2931_v34 = vrot.slane %v2929_v29, 2  ;;  %v5346_v29 = vld [vmem:[%s5426_s6 + $0x28] sm:$0xff]  }
  0xd0   : > { %v1413_v38 = vrot.slane %v5346_v29, 1  ;;  %v5351_v29 = vld [vmem:[%s5426_s6 + $0x50] sm:$0xff]  }
  0xd1   : > { %4840 = vmatmul.mubr.msk.bf16.gmra.mrb[16].mxu0 %vm508_vm2, %v2626_v61  ;;  %v1408_v61 = vsel %vm966_vm5, %v1406_v9, %v1407_v1  ;;  %v2935_v55 = vor.u32 %v2934_v45, %v2931_v34  ;;  %v3459_v9 = vsel %vm563_vm0, %v5878_v50, 0  ;;  %v2977_v50 = vshll.u32 %v5893_v12, 16 }
  0xd2   : > { %4843 = vmatprep.mubr.msk.bf16.mxu0 %vm508_vm2, %v2628_v40  ;;  %v2941_v40 = vshll.u32 %v5845_v51, 16  ;;  %v1416_v45 = vsel %vm966_vm5, %v1413_v38, %v1415_v13 }
  0xd6   : > { %4692 = vmatmul.mubr.msk.bf16.gmra.mrb[20].mxu1 %vm508_vm2, %v991_v14  ;;  %v2927_v14 = vor.u32 %v2926_v17, %v2923_v16  ;;  %v2970_v16 = vrot.slane %v2968_v35, 3 }
  0xd7   : > { %4695 = vmatprep.mubr.msk.bf16.mxu1 %vm508_vm2, %v993_v23  ;;  %v2947_v23 = vshrl.u32 %v5850_v0, 16 }
  0xd8   : > { %v2936_v5 = vsel %vm2919_vm6, %v2927_v14, %v2935_v55 }
  0xd9   : > { %4844 = vmatmul.mubr.msk.bf16.gmra.mrb[20].mxu0 %vm508_vm2, %v2630_v3  ;;  %v1409_v3 = vrot.slane %v5344_v4, 1  ;;  %v2949_v37 = vrot.slane %v2947_v23, 2  ;;  %v5349_v4 = vld [vmem:[%s5426_s6 + $0x40] sm:$0xff]  }
  0xda   : > { %4847 = vmatprep.mubr.msk.bf16.mxu0 %vm508_vm2, %v2632_v53  ;;  %v2940_v53 = vrot.slane %v2938_v19, 2  ;;  %v2986_v19 = vshll.u32 %v5898_v42, 16 }
  0xdb   : > { %v1410_v7 = vsel %vm966_vm5, %v1407_v1, %v1409_v3  ;;  %v2967_v1 = vrot.slane %v2965_v43, 2 }
  0xdd   : > { %v2971_v25 = vor.u32 %v2970_v16, %v2967_v1  ;;  %v3013_v1 = vshll.u32 %v5929_v8, 16 }
  0xde   : > { %4696 = vmatmul.mubr.msk.bf16.gmra.mrb[24].mxu1 %vm508_vm2, %v995_v11  ;;  %v2943_v11 = vrot.slane %v2941_v40, 3  ;;  %v5348_v40 = vld [vmem:[%s5426_s6 + $0x38] sm:$0xff]  }
  0xdf   : > { %4699 = vmatprep.mubr.msk.bf16.mxu1 %vm508_vm2, %v997_v59  ;;  %v1411_v59 = vrot.slane %v5345_v39, 1  ;;  %v1417_v14 = vrot.slane %v5348_v40, 1 }
  0xe1   : > { %4848 = vmatmul.mubr.msk.bf16.gmra.mrb[24].mxu0 %vm508_vm2, %v2634_v22  ;;  %v2952_v22 = vrot.slane %v2950_v21, 3  ;;  %v1414_v17 = vsel %vm966_vm5, %v1411_v59, %v1413_v38  ;;  %v2979_v21 = vrot.slane %v2977_v50, 3  ;;  %v1418_v39 = vsel %vm966_vm5, %v1415_v13, %v1417_v14 }
  0xe2   : > { %4851 = vmatprep.mubr.msk.bf16.mxu0 %vm508_vm2, %v2636_v56  ;;  %v2944_v56 = vor.u32 %v2943_v11, %v2940_v53  ;;  %v2988_v11 = vrot.slane %v2986_v19, 3  ;;  %v1423_v38 = vrot.slane %v5351_v29, 1  ;;  %v5353_v19 = vld [vmem:[%s5426_s6 + $0x60] sm:$0xff]  }
  0xe3   : > { %v2953_v26 = vor.u32 %v2952_v22, %v2949_v37  ;;  %v2992_v37 = vshrl.u32 %v5911_v30, 16  ;;  %v2995_v22 = vshll.u32 %v5911_v30, 16  ;;  %v1427_v40 = vrot.slane %v5353_v19, 1 }
  0xe4   : > { %v2945_v46 = vsel %vm2919_vm6, %v2935_v55, %v2944_v56  ;;  %v3067_v19 = vshll.u32 %v5983_v24, 16 }
  0xe5   : > { %v2954_v6 = vsel %vm2919_vm6, %v2944_v56, %v2953_v26  ;;  %v3001_v56 = vshrl.u32 %v5916_v27, 16  ;;  %v2994_v43 = vrot.slane %v2992_v37, 2  ;;  %v2997_v35 = vrot.slane %v2995_v22, 3 }
  0xe6   : > { %4700 = vmatmul.mubr.msk.bf16.gmra.mrb[28].mxu1 %vm508_vm2, %v999_v15  ;;  %v1412_v15 = vsel %vm966_vm5, %v1409_v3, %v1411_v59  ;;  %v1419_v3 = vrot.slane %v5349_v4, 1 }
  0xe7   : > { %4703 = vmatprep.mubr.msk.bf16.mxu1 %vm508_vm2, %v1001_v31  ;;  %v2959_v31 = vshll.u32 %v5866_v2, 16  ;;  %v2998_v13 = vor.u32 %v2997_v35, %v2994_v43 }
  0xe9   : > { %4852 = vmatmul.mubr.msk.bf16.gmra.mrb[28].mxu0 %vm508_vm2, %v2638_v20  ;;  %v2958_v20 = vrot.slane %v2956_v54, 2  ;;  %v5350_v54 = vld [vmem:[%s5426_s6 + $0x48] sm:$0xff]  }
  0xea   : > { %4855 = vmatprep.mubr.msk.bf16.mxu0 %vm508_vm2, %v2640_v52  ;;  %v2961_v52 = vrot.slane %v2959_v31, 3  ;;  %v1421_v31 = vrot.slane %v5350_v54, 1 }
  0xec   : > { %v2962_v34 = vor.u32 %v2961_v52, %v2958_v20  ;;  %v3003_v20 = vrot.slane %v3001_v56, 2  ;;  %v1422_v60 = vsel %vm966_vm5, %v1419_v3, %v1421_v31 }
  0xee   : > { %4704 = vmatmul.mubr.msk.bf16.gmra.mrb[32].mxu1 %vm508_vm2, %v1003_v36  ;;  %v2974_v36 = vshrl.u32 %v5893_v12, 16  ;;  %v2963_v55 = vsel %vm2919_vm6, %v2953_v26, %v2962_v34 }
  0xef   : > { %4709 = vmatprep.mubr.msk.bf16.mxu1 %vm508_vm2, %v1408_v61  ;;  %v2983_v61 = vshrl.u32 %v5898_v42, 16 }
  0xf0   : > { %v2976_v23 = vrot.slane %v2974_v36, 2 }
  0xf1   : > { %4856 = vmatmul.mubr.msk.bf16.gmra.mrb[32].mxu0 %vm508_vm2, %v2642_v47  ;;  %v2972_v47 = vsel %vm2919_vm6, %v2962_v34, %v2971_v25  ;;  %v2985_v53 = vrot.slane %v2983_v61, 2  ;;  %v3022_v34 = vshll.u32 %v5934_v10, 16  ;;  %v3015_v61 = vrot.slane %v3013_v1, 3 }
  0xf2   : > { %4861 = vmatprep.mubr.msk.bf16.mxu0 %vm508_vm2, %v2936_v5  ;;  %v2980_v59 = vor.u32 %v2979_v21, %v2976_v23  ;;  %v1420_v5 = vsel %vm966_vm5, %v1417_v14, %v1419_v3 }
  0xf3   : > { %v3024_v23 = vrot.slane %v3022_v34, 3 }
  0xf4   : > { %v2981_v26 = vsel %vm2919_vm6, %v2971_v25, %v2980_v59 }
  0xf6   : > { %4710 = vmatmul.mubr.msk.bf16.vlgmr.msra.gmra.mrb[0].mxu1 %vm508_vm2, %v1410_v7  ;;  %v2989_v7 = vor.u32 %v2988_v11, %v2985_v53  ;;  %v3031_v53 = vshll.u32 %v5947_v58, 16 }
  0xf7   : > { %4713 = vmatprep.mubr.msk.bf16.mxu1 %vm508_vm2, %v1412_v15  ;;  %v3004_v15 = vshll.u32 %v5916_v27, 16 }
  0xf8   : > { %v2999_v50 = vsel %vm2919_vm6, %v2989_v7, %v2998_v13  ;;  %v3033_v56 = vrot.slane %v3031_v53, 3 }
  0xf9   : > { %4862 = vmatmul.mubr.msk.bf16.vlgmr.msra.gmra.mrb[0].mxu0 %vm508_vm2, %v2945_v46  ;;  %v2990_v46 = vsel %vm2919_vm6, %v2980_v59, %v2989_v7  ;;  %v3006_v52 = vrot.slane %v3004_v15, 3  ;;  %v3040_v59 = vshll.u32 %v5952_v33, 16  ;;  %v5355_v15 = vld [vmem:[%s5426_s6 + $0x70] sm:$0xff]  }
  0xfa   : > { %4898 = vmatpush3.bf16.msra.mxu0 %v3459_v9  ;;  %4865 = vmatprep.mubr.msk.bf16.mxu0 %vm508_vm2, %v2954_v6  ;;  %v1424_v9 = vsel %vm966_vm5, %v1421_v31, %v1423_v38  ;;  %v3010_v6 = vshrl.u32 %v5929_v8, 16  ;;  %v1431_v54 = vrot.slane %v5355_v15, 1 }
  0xfb   : > { %v3007_v16 = vor.u32 %v3006_v52, %v3003_v20  ;;  %v3042_v43 = vrot.slane %v3040_v59, 3  ;;  %v3049_v20 = vshll.u32 %v5965_v48, 16 }
  0xfc   : > { %v3012_v25 = vrot.slane %v3010_v6, 2 }
  0xfd   : > { %v3008_v14 = vsel %vm2919_vm6, %v2998_v13, %v3007_v16  ;;  %v3058_v13 = vshll.u32 %v5970_v28, 16 }
  0xfe   : > { %4714 = vmatmul.mubr.msk.bf16.gmra.mrb[4].mxu1 %vm508_vm2, %v1414_v17  ;;  %v3019_v17 = vshrl.u32 %v5934_v10, 16  ;;  %v3016_v4 = vor.u32 %v3015_v61, %v3012_v25  ;;  %v3064_v61 = vshrl.u32 %v5983_v24, 16 }
  0xff   : > { %4717 = vmatprep.mubr.msk.bf16.mxu1 %vm508_vm2, %v1416_v45  ;;  %v5352_v45 = vld [vmem:[%s5426_s6 + $0x58] sm:$0xff]  }
 0x100   : > { %v1425_v36 = vrot.slane %v5352_v45, 1  ;;  %v3017_v22 = vsel %vm2919_vm6, %v3007_v16, %v3016_v4  ;;  %v3051_v16 = vrot.slane %v3049_v20, 3  ;;  %v3368_v20 = vrot.slane %v5833_v18, 3 }
 0x101   : > { %4866 = vmatmul.mubr.msk.bf16.gmra.mrb[4].mxu0 %vm508_vm2, %v2963_v55  ;;  %v3021_v55 = vrot.slane %v3019_v17, 2  ;;  %v1435_v17 = vrot.slane %v5639_v62, 1  ;;  %v3073_v62 = vshrl.u32 %v5987_v63, 16  ;;  %v3374_v18 = vrot.slane %v5866_v2, 3 }
 0x102   : > { %4869 = vmatprep.mubr.msk.bf16.mxu0 %vm508_vm2, %v2972_v47  ;;  %v1426_v21 = vsel %vm966_vm5, %v1423_v38, %v1425_v36  ;;  %v1428_v3 = vsel %vm966_vm5, %v1425_v36, %v1427_v40  ;;  %v3028_v47 = vshrl.u32 %v5947_v58, 16  ;;  %v3060_v36 = vrot.slane %v3058_v13, 3 }
 0x103   : > { %v3025_v11 = vor.u32 %v3024_v23, %v3021_v55  ;;  %v1437_v55 = vrot.slane %v5660_v32, 1  ;;  %v3372_v13 = vrot.slane %v5850_v0, 3  ;;  %v3380_v0 = vrot.slane %v5898_v42, 3 }
 0x104   : > { %v3030_v7 = vrot.slane %v3028_v47, 2  ;;  %v6122_v47 = vld [vmem:[%s5426_s6 + $0xa0] ss:$0 sps:$4 sm:$0x77]   ;;  %v3382_v2 = vrot.slane %v5911_v30, 3  ;;  %v3386_v30 = vrot.slane %v5929_v8, 3 }
 0x105   : > { %v3026_v31 = vsel %vm2919_vm6, %v3016_v4, %v3025_v11  ;;  %v3069_v4 = vrot.slane %v3067_v19, 3  ;;  %v1438_v59 = vsel %vm966_vm5, %v1435_v17, %v1437_v55  ;;  %v3392_v19 = vrot.slane %v5952_v33, 3 }
 0x106   : > { %4718 = vmatmul.mubr.msk.bf16.gmra.mrb[8].mxu1 %vm508_vm2, %v1418_v39  ;;  %v3037_v39 = vshrl.u32 %v5952_v33, 16  ;;  %v3034_v29 = vor.u32 %v3033_v56, %v3030_v7  ;;  %v3360_v56 = vld [vmem:[%s5426_s6 + $0x10] sm:$0x8]  ;;  %v3383_v42 = vsel %vm3366_vm7, %v3380_v0, %v3382_v2  ;;  %v3394_v8 = vrot.slane %v5965_v48, 3 }
 0x107   : > { %4721 = vmatprep.mubr.msk.bf16.mxu1 %vm508_vm2, %v1420_v5  ;;  %v5354_v5 = vld [vmem:[%s5426_s6 + $0x68] sm:$0xff]   ;;  %v3400_v33 = vrot.slane %v5987_v63, 3 }
 0x108   : > { %v1429_v37 = vrot.slane %v5354_v5, 1  ;;  %v3035_v6 = vsel %vm2919_vm6, %v3025_v11, %v3034_v29  ;;  %v3075_v11 = vrot.slane %v3073_v62, 2  ;;  %v5340_v5 = vld [vmem:[%s5426_s6 + $0x98] ss:$0 sps:$4 sm:$0x11]  }
 0x109   : > { %4870 = vmatmul.mubr.msk.bf16.gmra.mrb[8].mxu0 %vm508_vm2, %v2981_v26  ;;  %v3039_v26 = vrot.slane %v3037_v39, 2  ;;  %v1441_v15 = vrot.slane %v5340_v5, 1 }
 0x10a   : > { %4873 = vmatprep.mubr.msk.bf16.mxu0 %vm508_vm2, %v2990_v46  ;;  %v1430_v35 = vsel %vm966_vm5, %v1427_v40, %v1429_v37  ;;  %v1432_v38 = vsel %vm966_vm5, %v1429_v37, %v1431_v54  ;;  %v3046_v46 = vshrl.u32 %v5965_v48, 16  ;;  %v3402_v48 = vrot.slane %v6122_v47, 3 }
 0x10b   : > { %v3043_v52 = vor.u32 %v3042_v43, %v3039_v26 }
 0x10c   : > { %v3048_v1 = vrot.slane %v3046_v46, 2 }
 0x10d   : > { %v3044_v34 = vsel %vm2919_vm6, %v3034_v29, %v3043_v52 }
 0x10e   : > { %4722 = vmatmul.mubr.msk.bf16.gmra.mrb[12].mxu1 %vm508_vm2, %v1422_v60  ;;  %v3055_v60 = vshrl.u32 %v5970_v28, 16  ;;  %v3052_v25 = vor.u32 %v3051_v16, %v3048_v1  ;;  %v3376_v1 = vrot.slane %v5873_v41, 3  ;;  %v3375_v16 = vsel %vm3366_vm7, %v3372_v13, %v3374_v18  ;;  %v3807_v41 = vld [vmem:[%s6433_s3] sm:$0xf] }
 0x10f   : > { %4725 = vmatprep.mubr.msk.bf16.mxu1 %vm508_vm2, %v1424_v9  ;;  %v1433_v9 = vrot.slane %v5631_v44, 1  ;;  %5270 = vmatprep.subr.msk.bf16.mxu1 %vm3870_vm8, %v3807_v41 }
 0x110   : > { %v3057_v45 = vrot.slane %v3055_v60, 2  ;;  %v3053_v23 = vsel %vm2919_vm6, %v3043_v52, %v3052_v25 }
 0x111   : > { %4874 = vmatmul.mubr.msk.bf16.gmra.mrb[12].mxu0 %vm508_vm2, %v2999_v50  ;;  %v1434_v50 = vsel %vm966_vm5, %v1431_v54, %v1433_v9  ;;  %v1436_v44 = vsel %vm966_vm5, %v1433_v9, %v1435_v17  ;;  %v3377_v17 = vsel %vm3366_vm7, %v3374_v18, %v3376_v1 }
 0x112   : > { %4877 = vmatprep.mubr.msk.bf16.mxu0 %vm508_vm2, %v3008_v14  ;;  %v3061_v40 = vor.u32 %v3060_v36, %v3057_v45  ;;  %v3076_v14 = vshll.u32 %v5987_v63, 16  ;;  %v3384_v36 = vrot.slane %v5916_v27, 3  ;;  %v3390_v27 = vrot.slane %v5947_v58, 3 }
 0x113   : > { %v3398_v58 = vrot.slane %v5983_v24, 3 }
 0x114   : > { %v3062_v53 = vsel %vm2919_vm6, %v3052_v25, %v3061_v40  ;;  %v3078_v39 = vrot.slane %v3076_v14, 3  ;;  %v3388_v25 = vrot.slane %v5934_v10, 3  ;;  %v3393_v62 = vsel %vm3366_vm7, %v3390_v27, %v3392_v19 }
 0x115   : > { %v3396_v10 = vrot.slane %v5970_v28, 3  ;;  %v3395_v14 = vsel %vm3366_vm7, %v3392_v19, %v3394_v8  ;;  %v3403_v28 = vsel %vm3366_vm7, %v3400_v33, %v3402_v48 }
 0x116   : > { %4726 = vmatmul.mubr.msk.bf16.gmra.mrb[16].mxu1 %vm508_vm2, %v1426_v21  ;;  %v3066_v21 = vrot.slane %v3064_v61, 2  ;;  %v3079_v7 = vor.u32 %v3078_v39, %v3075_v11  ;;  %v3389_v61 = vsel %vm3366_vm7, %v3386_v30, %v3388_v25 }
 0x117   : > { %4729 = vmatprep.mubr.msk.bf16.mxu1 %vm508_vm2, %v1428_v3  ;;  %v1439_v3 = vrot.slane %v5672_v57, 1  ;;  %v3085_v57 = vshll.u32 %v6122_v47, 16 }
 0x118   : > { %v3070_v32 = vor.u32 %v3069_v4, %v3066_v21  ;;  %v3401_v21 = vsel %vm3366_vm7, %v3398_v58, %v3400_v33 }
 0x119   : > { %4878 = vmatmul.mubr.msk.bf16.gmra.mrb[16].mxu0 %vm508_vm2, %v3017_v22  ;;  %v1440_v37 = vsel %vm966_vm5, %v1437_v55, %v1439_v3  ;;  %v3082_v22 = vshrl.u32 %v6122_v47, 16  ;;  %v3087_v26 = vrot.slane %v3085_v57, 3  ;;  %v1442_v29 = vsel %vm966_vm5, %v1439_v3, %v1441_v15 }
 0x11a   : > { %4881 = vmatprep.mubr.msk.bf16.mxu0 %vm508_vm2, %v3026_v31  ;;  %v3071_v54 = vsel %vm2919_vm6, %v3061_v40, %v3070_v32  ;;  %v3080_v43 = vsel %vm2919_vm6, %v3070_v32, %v3079_v7  ;;  %v3391_v40 = vsel %vm3366_vm7, %v3388_v25, %v3390_v27  ;;  %v3397_v55 = vsel %vm3366_vm7, %v3394_v8, %v3396_v10 }
 0x11b   : > { %v3084_v31 = vrot.slane %v3082_v22, 2 }
 0x11e   : > { %4730 = vmatmul.mubr.msk.bf16.gmra.mrb[20].mxu1 %vm508_vm2, %v1430_v35  ;;  %v4362_v35 = vcombine.low %v3360_v56, %v5820_v49  ;;  %v3370_v49 = vrot.slane %v5845_v51, 3  ;;  %v3378_v51 = vrot.slane %v5893_v12, 3  ;;  %v3872_v12 = vsel %vm3870_vm8, %v3807_v41, 0 }
 0x11f   : > { %4733 = vmatprep.mubr.msk.bf16.mxu1 %vm508_vm2, %v1432_v38  ;;  %v3088_v38 = vor.u32 %v3087_v26, %v3084_v31  ;;  %4936 = vmatpush3.bf16.msra.mxu1 %v3872_v12 }
 0x120   : > { %v3367_v46 = vrot.slane %v4362_v35, 3  ;;  %v3371_v9 = vsel %vm3366_vm7, %v3368_v20, %v3370_v49  ;;  %v3381_v45 = vsel %vm3366_vm7, %v3378_v51, %v3380_v0  ;;  %v6260_v0 = vld [vmem:[%s6432_s2] ss:$0 sm:$0xff] }
 0x121   : > { %4882 = vmatmul.mubr.msk.bf16.gmra.mrb[20].mxu0 %vm508_vm2, %v3035_v6  ;;  %v3089_v52 = vsel %vm2919_vm6, %v3079_v7, %v3088_v38  ;;  %v3373_v6 = vsel %vm3366_vm7, %v3370_v49, %v3372_v13 }
 0x122   : > { %4885 = vmatprep.mubr.msk.bf16.mxu0 %vm508_vm2, %v3044_v34  ;;  %v3369_v60 = vsel %vm3366_vm7, %v3367_v46, %v3368_v20  ;;  %v3379_v34 = vsel %vm3366_vm7, %v3376_v1, %v3378_v51 }
 0x126   : > { %4734 = vmatmul.mubr.msk.bf16.gmra.mrb[24].mxu1 %vm508_vm2, %v1434_v50  ;;  %v3385_v50 = vsel %vm3366_vm7, %v3382_v2, %v3384_v36 }
 0x127   : > { %4737 = vmatprep.mubr.msk.bf16.mxu1 %vm508_vm2, %v1436_v44  ;;  %v3387_v44 = vsel %vm3366_vm7, %v3384_v36, %v3386_v30 }
 0x129   : > { %4886 = vmatmul.mubr.msk.bf16.gmra.mrb[24].mxu0 %vm508_vm2, %v3053_v23  ;;  %v3399_v23 = vsel %vm3366_vm7, %v3396_v10, %v3398_v58 }
 0x12a   : > { %4889 = vmatprep.mubr.msk.bf16.mxu0 %vm508_vm2, %v3062_v53 }
 0x12e   : > { %4738 = vmatmul.mubr.msk.bf16.gmra.mrb[28].mxu1 %vm508_vm2, %v1438_v59 }
 0x12f   : > { %4741 = vmatprep.mubr.msk.bf16.mxu1 %vm508_vm2, %v1440_v37 }
 0x131   : > { %4890 = vmatmul.mubr.msk.bf16.gmra.mrb[28].mxu0 %vm508_vm2, %v3071_v54 }
 0x132   : > { %4893 = vmatprep.mubr.msk.bf16.mxu0 %vm508_vm2, %v3080_v43 }
 0x136   : > { %4742 = vmatmul.mubr.msk.bf16.gmra.mrb[32].mxu1 %vm508_vm2, %v1442_v29 }
 0x139   : > { %4894 = vmatmul.mubr.msk.bf16.gmra.mrb[32].mxu0 %vm508_vm2, %v3089_v52 }
 0x13a   : > { %4899 = vmatprep.mubr.msk.bf16.mxu0 %vm508_vm2, %v3369_v60 }
 0x141   : > { %4900 = vmatmul.mubr.msk.bf16.vlgmr.msra.gmra.mrb[0].mxu0 %vm508_vm2, %v3371_v9 }
 0x142   : > { %4903 = vmatprep.mubr.msk.bf16.mxu0 %vm508_vm2, %v3373_v6 }
 0x149   : > { %4904 = vmatmul.mubr.msk.bf16.gmra.mrb[4].mxu0 %vm508_vm2, %v3375_v16 }
 0x14a   : > { %4907 = vmatprep.mubr.msk.bf16.mxu0 %vm508_vm2, %v3377_v17 }
 0x151   : > { %4908 = vmatmul.mubr.msk.bf16.gmra.mrb[8].mxu0 %vm508_vm2, %v3379_v34 }
 0x152   : > { %4911 = vmatprep.mubr.msk.bf16.mxu0 %vm508_vm2, %v3381_v45 }
 0x159   : > { %4912 = vmatmul.mubr.msk.bf16.gmra.mrb[12].mxu0 %vm508_vm2, %v3383_v42 }
 0x15a   : > { %4915 = vmatprep.mubr.msk.bf16.mxu0 %vm508_vm2, %v3385_v50 }
 0x161   : > { %4916 = vmatmul.mubr.msk.bf16.gmra.mrb[16].mxu0 %vm508_vm2, %v3387_v44 }
 0x162   : > { %4919 = vmatprep.mubr.msk.bf16.mxu0 %vm508_vm2, %v3389_v61 }
 0x169   : > { %4920 = vmatmul.mubr.msk.bf16.gmra.mrb[20].mxu0 %vm508_vm2, %v3391_v40 }
 0x16a   : > { %4923 = vmatprep.mubr.msk.bf16.mxu0 %vm508_vm2, %v3393_v62 }
 0x171   : > { %4924 = vmatmul.mubr.msk.bf16.gmra.mrb[24].mxu0 %vm508_vm2, %v3395_v14 }
 0x172   : > { %4927 = vmatprep.mubr.msk.bf16.mxu0 %vm508_vm2, %v3397_v55 }
 0x179   : > { %4928 = vmatmul.mubr.msk.bf16.gmra.mrb[28].mxu0 %vm508_vm2, %v3399_v23 }
 0x17a   : > { %4931 = vmatprep.mubr.msk.bf16.mxu0 %vm508_vm2, %v3401_v21 }
 0x181   : > { %4932 = vmatmul.mubr.msk.bf16.gmra.mrb[32].mxu0 %vm508_vm2, %v3403_v28 }
 0x1c9   : > { %v4711_v4 = vpop.f32.mrb[0].mxu1 }
 0x1ca   : > { %v1534_v3 = vpop.f32.mrb[1].mxu1 }
 0x1cb   : > { %v4712_v53 = vpop.f32.mrb[2].mxu1 }
 0x1cc   : > { %v1537_v24 = vpop.f32.mrb[3].mxu1 }
 0x1d1   : > { %v4715_v11 = vpop.f32.mrb[4].mxu1 }
 0x1d2   : > { %v1550_v63 = vpop.f32.mrb[5].mxu1 }
 0x1d3   : > { %v4716_v39 = vpop.f32.mrb[6].mxu1 }
 0x1d4   : > { %v1553_v59 = vpop.f32.mrb[7].mxu1 }
 0x1d9   : > { %v6201_v5 = vpop.f32.mrb[8].mxu1 }
 0x1da   : > { %v6203_v32 = vpop.f32.mrb[9].mxu1 }
 0x1db   : > { %v6205_v37 = vpop.f32.mrb[10].mxu1 }
 0x1dc   : > { %v6207_v22 = vpop.f32.mrb[11].mxu1 }
 0x1e1   : > { %v6209_v47 = vpop.f32.mrb[12].mxu1 }
 0x1e2   : > { %v6211_v57 = vpop.f32.mrb[13].mxu1 }
 0x1e3   : > { %v6213_v7 = vpop.f32.mrb[14].mxu1 }
 0x1e4   : > { %v6215_v56 = vpop.f32.mrb[15].mxu1 }
 0x1e9   : > { %v6217_v15 = vpop.f32.mrb[16].mxu1 }
 0x1ea   : > { %v6219_v54 = vpop.f32.mrb[17].mxu1 }
 0x1eb   : > { %v6221_v31 = vpop.f32.mrb[18].mxu1 }
 0x1ec   : > { %v6223_v26 = vpop.f32.mrb[19].mxu1 }
 0x1f1   : > { %v6225_v43 = vpop.f32.mrb[20].mxu1 }
 0x1f2   : > { %v6227_v35 = vpop.f32.mrb[21].mxu1 }
 0x1f3   : > { %v6229_v29 = vpop.f32.mrb[22].mxu1 }
 0x1f4   : > { %v6231_v38 = vpop.f32.mrb[23].mxu1 }
 0x1f9   : > { %v6233_v46 = vpop.f32.mrb[24].mxu1 }
 0x1fa   : > { %v6235_v20 = vpop.f32.mrb[25].mxu1 }
 0x1fb   : > { %v6237_v52 = vpop.f32.mrb[26].mxu1 }
 0x1fc   : > { %v6239_v60 = vpop.f32.mrb[27].mxu1 }
 0x201   : > { %v6241_v49 = vpop.f32.mrb[28].mxu1 }
 0x202   : > { %v6243_v13 = vpop.f32.mrb[29].mxu1 }
 0x203   : > { %v6245_v9 = vpop.f32.mrb[30].mxu1 }
 0x204   : > { %v6247_v6 = vpop.f32.mrb[31].mxu1 }
 0x209   : > { %v6249_v18 = vpop.f32.mrb[32].mxu1 }
 0x20a   : > { %v6251_v1 = vpop.f32.mrb[33].mxu1 }
 0x20b   : > { %v6253_v16 = vpop.f32.mrb[34].mxu1 }
 0x20c   : > { %v6255_v17 = vpop.f32.mrb[35].mxu1 }
 0x214   : > { %v4901_v51 = vpop.f32.mrb[0].mxu0 }
 0x215   : > { %v4973_v34 = vadd.f32 %v4901_v51, %v4711_v4  ;;  %v3495_v45 = vpop.f32.mrb[1].mxu0 }
 0x216   : > { %v4974_v2 = vadd.f32 %v3495_v45, %v1534_v3  ;;  %v4902_v41 = vpop.f32.mrb[2].mxu0 }
 0x217   : > { %v3683_v36 = vadd.f32 %v4973_v34, %v6260_v0  ;;  %v4975_v12 = vadd.f32 %v4902_v41, %v4712_v53  ;;  %v3498_v42 = vpop.f32.mrb[3].mxu0 }
 0x218   : > { %v3681_v50 = vadd.f32 %v4974_v2, %v6260_v0  ;;  %v4976_v30 = vadd.f32 %v3498_v42, %v1537_v24 }
 0x219   : > { %v3719_v25 = vmul.f32 0.1, %v3683_v36  ;;  %v3684_v44 = vadd.f32 %v4975_v12, %v6260_v0 }
 0x21a   : > { %v3717_v61 = vmul.f32 0.1, %v3681_v50  ;;  %v3682_v27 = vadd.f32 %v4976_v30, %v6260_v0 }
 0x21b   : > { %v3720_v19 = vmul.f32 0.1, %v3684_v44  ;;  %v3755_v8 = vmax.f32 %v3683_v36, %v3719_v25 }
 0x21c   : > { %v3718_v40 = vmul.f32 0.1, %v3682_v27  ;;  %v4905_v62 = vpop.f32.mrb[4].mxu0  ;;  %v3753_v58 = vmax.f32 %v3681_v50, %v3717_v61 }
 0x21d   : > { %v3756_v10 = vmax.f32 %v3684_v44, %v3720_v19  ;;  %v4977_v14 = vadd.f32 %v4905_v62, %v4715_v11  ;;  %v3511_v55 = vpop.f32.mrb[5].mxu0 }
 0x21e   : > { %v3754_v33 = vmax.f32 %v3682_v27, %v3718_v40  ;;  %v4978_v23 = vadd.f32 %v3511_v55, %v1550_v63  ;;  %v4906_v21 = vpop.f32.mrb[6].mxu0 }
 0x21f   : > { %v3790_v48 = vpack.c.bf16 %v3756_v10, %v3755_v8  ;;  %v3687_v28 = vadd.f32 %v4977_v14, %v6260_v0  ;;  %v4979_v4 = vadd.f32 %v4906_v21, %v4716_v39  ;;  %v3514_v3 = vpop.f32.mrb[7].mxu0 }
 0x220   : > { %v3789_v53 = vpack.c.bf16 %v3754_v33, %v3753_v58  ;;  %v3685_v24 = vadd.f32 %v4978_v23, %v6260_v0  ;;  %v4980_v51 = vadd.f32 %v3514_v3, %v1553_v59 }
 0x221   : > { %v3723_v34 = vmul.f32 0.1, %v3687_v28  ;;  %v3688_v45 = vadd.f32 %v4979_v4, %v6260_v0 }
 0x222   : > { %v3721_v2 = vmul.f32 0.1, %v3685_v24  ;;  %v3686_v11 = vadd.f32 %v4980_v51, %v6260_v0  ;;  %4937 = vmatprep.mubr.msk.bf16.mxu1 %vm3815_vm9, %v3789_v53 }
 0x223   : > { %v3724_v63 = vmul.f32 0.1, %v3688_v45  ;;  %4938 = vmatmul.mubr.msk.bf16.vlgmr.msra.gmra.mrb[36].mxu1 %vm3815_vm9, %v3790_v48  ;;  %v3759_v39 = vmax.f32 %v3687_v28, %v3723_v34 }
 0x224   : > { %v3722_v41 = vmul.f32 0.1, %v3686_v11  ;;  %v4909_v36 = vpop.f32.mrb[8].mxu0  ;;  %v3757_v30 = vmax.f32 %v3685_v24, %v3721_v2 }
 0x225   : > { %v3760_v12 = vmax.f32 %v3688_v45, %v3724_v63  ;;  %v4981_v42 = vadd.f32 %v4909_v36, %v6201_v5  ;;  %v3527_v50 = vpop.f32.mrb[9].mxu0 }
 0x226   : > { %v3758_v59 = vmax.f32 %v3686_v11, %v3722_v41  ;;  %v4982_v25 = vadd.f32 %v3527_v50, %v6203_v32  ;;  %v4910_v44 = vpop.f32.mrb[10].mxu0 }
 0x227   : > { %v3792_v61 = vpack.c.bf16 %v3760_v12, %v3759_v39  ;;  %v3691_v27 = vadd.f32 %v4981_v42, %v6260_v0  ;;  %v4983_v19 = vadd.f32 %v4910_v44, %v6205_v37  ;;  %v3530_v40 = vpop.f32.mrb[11].mxu0 }
 0x228   : > { %v3791_v62 = vpack.c.bf16 %v3758_v59, %v3757_v30  ;;  %v3689_v8 = vadd.f32 %v4982_v25, %v6260_v0  ;;  %v4984_v10 = vadd.f32 %v3530_v40, %v6207_v22 }
 0x229   : > { %v3727_v14 = vmul.f32 0.1, %v3691_v27  ;;  %v3692_v5 = vadd.f32 %v4983_v19, %v6260_v0 }
 0x22a   : > { %v3725_v55 = vmul.f32 0.1, %v3689_v8  ;;  %v3690_v58 = vadd.f32 %v4984_v10, %v6260_v0  ;;  %4941 = vmatprep.mubr.msk.bf16.mxu1 %vm3815_vm9, %v3791_v62 }
 0x22b   : > { %v3728_v32 = vmul.f32 0.1, %v3692_v5  ;;  %4942 = vmatmul.mubr.msk.bf16.gmra.mrb[40].mxu1 %vm3815_vm9, %v3792_v61  ;;  %v3763_v37 = vmax.f32 %v3691_v27, %v3727_v14 }
 0x22c   : > { %v3726_v33 = vmul.f32 0.1, %v3690_v58  ;;  %v4913_v23 = vpop.f32.mrb[12].mxu0  ;;  %v3761_v4 = vmax.f32 %v3689_v8, %v3725_v55 }
 0x22d   : > { %v3764_v21 = vmax.f32 %v3692_v5, %v3728_v32  ;;  %v4985_v48 = vadd.f32 %v4913_v23, %v6209_v47  ;;  %v3543_v28 = vpop.f32.mrb[13].mxu0 }
 0x22e   : > { %v3762_v22 = vmax.f32 %v3690_v58, %v3726_v33  ;;  %v4986_v3 = vadd.f32 %v3543_v28, %v6211_v57  ;;  %v4914_v53 = vpop.f32.mrb[14].mxu0 }
 0x22f   : > { %v3794_v24 = vpack.c.bf16 %v3764_v21, %v3763_v37  ;;  %v3695_v51 = vadd.f32 %v4985_v48, %v6260_v0  ;;  %v4987_v34 = vadd.f32 %v4914_v53, %v6213_v7  ;;  %v3546_v45 = vpop.f32.mrb[15].mxu0 }
 0x230   : > { %v3793_v2 = vpack.c.bf16 %v3762_v22, %v3761_v4  ;;  %v3693_v11 = vadd.f32 %v4986_v3, %v6260_v0  ;;  %v4988_v63 = vadd.f32 %v3546_v45, %v6215_v56 }
 0x231   : > { %v3731_v41 = vmul.f32 0.1, %v3695_v51  ;;  %v3696_v47 = vadd.f32 %v4987_v34, %v6260_v0 }
 0x232   : > { %v3729_v36 = vmul.f32 0.1, %v3693_v11  ;;  %v3694_v39 = vadd.f32 %v4988_v63, %v6260_v0  ;;  %4945 = vmatprep.mubr.msk.bf16.mxu1 %vm3815_vm9, %v3793_v2 }
 0x233   : > { %v3732_v57 = vmul.f32 0.1, %v3696_v47  ;;  %4946 = vmatmul.mubr.msk.bf16.gmra.mrb[44].mxu1 %vm3815_vm9, %v3794_v24  ;;  %v3767_v7 = vmax.f32 %v3695_v51, %v3731_v41 }
 0x234   : > { %v3730_v12 = vmul.f32 0.1, %v3694_v39  ;;  %v4917_v42 = vpop.f32.mrb[16].mxu0  ;;  %v3765_v25 = vmax.f32 %v3693_v11, %v3729_v36 }
 0x235   : > { %v3768_v50 = vmax.f32 %v3696_v47, %v3732_v57  ;;  %v4989_v30 = vadd.f32 %v4917_v42, %v6217_v15  ;;  %v3559_v59 = vpop.f32.mrb[17].mxu0 }
 0x236   : > { %v3766_v56 = vmax.f32 %v3694_v39, %v3730_v12  ;;  %v4990_v44 = vadd.f32 %v3559_v59, %v6219_v54  ;;  %v4918_v61 = vpop.f32.mrb[18].mxu0 }
 0x237   : > { %v3796_v27 = vpack.c.bf16 %v3768_v50, %v3767_v7  ;;  %v3699_v19 = vadd.f32 %v4989_v30, %v6260_v0  ;;  %v4991_v40 = vadd.f32 %v4918_v61, %v6221_v31  ;;  %v3562_v62 = vpop.f32.mrb[19].mxu0 }
 0x238   : > { %v3795_v8 = vpack.c.bf16 %v3766_v56, %v3765_v25  ;;  %v3697_v10 = vadd.f32 %v4990_v44, %v6260_v0  ;;  %v4992_v14 = vadd.f32 %v3562_v62, %v6223_v26 }
 0x239   : > { %v3735_v5 = vmul.f32 0.1, %v3699_v19  ;;  %v3700_v15 = vadd.f32 %v4991_v40, %v6260_v0 }
 0x23a   : > { %v3733_v55 = vmul.f32 0.1, %v3697_v10  ;;  %v3698_v58 = vadd.f32 %v4992_v14, %v6260_v0  ;;  %4949 = vmatprep.mubr.msk.bf16.mxu1 %vm3815_vm9, %v3795_v8 }
 0x23b   : > { %v3736_v54 = vmul.f32 0.1, %v3700_v15  ;;  %4950 = vmatmul.mubr.msk.bf16.gmra.mrb[48].mxu1 %vm3815_vm9, %v3796_v27  ;;  %v3771_v31 = vmax.f32 %v3699_v19, %v3735_v5 }
 0x23c   : > { %v3734_v32 = vmul.f32 0.1, %v3698_v58  ;;  %v4921_v33 = vpop.f32.mrb[20].mxu0  ;;  %v3769_v48 = vmax.f32 %v3697_v10, %v3733_v55 }
 0x23d   : > { %v3772_v23 = vmax.f32 %v3700_v15, %v3736_v54  ;;  %v4993_v37 = vadd.f32 %v4921_v33, %v6225_v43  ;;  %v3575_v21 = vpop.f32.mrb[21].mxu0 }
 0x23e   : > { %v3770_v26 = vmax.f32 %v3698_v58, %v3734_v32  ;;  %v4994_v28 = vadd.f32 %v3575_v21, %v6227_v35  ;;  %v4922_v4 = vpop.f32.mrb[22].mxu0 }
 0x23f   : > { %v3798_v22 = vpack.c.bf16 %v3772_v23, %v3771_v31  ;;  %v3703_v3 = vadd.f32 %v4993_v37, %v6260_v0  ;;  %v4995_v53 = vadd.f32 %v4922_v4, %v6229_v29  ;;  %v3578_v24 = vpop.f32.mrb[23].mxu0 }
 0x240   : > { %v3797_v51 = vpack.c.bf16 %v3770_v26, %v3769_v48  ;;  %v3701_v34 = vadd.f32 %v4994_v28, %v6260_v0  ;;  %v4996_v45 = vadd.f32 %v3578_v24, %v6231_v38 }
 0x241   : > { %v3739_v2 = vmul.f32 0.1, %v3703_v3  ;;  %v3704_v43 = vadd.f32 %v4995_v53, %v6260_v0 }
 0x242   : > { %v3737_v11 = vmul.f32 0.1, %v3701_v34  ;;  %v3702_v63 = vadd.f32 %v4996_v45, %v6260_v0  ;;  %4953 = vmatprep.mubr.msk.bf16.mxu1 %vm3815_vm9, %v3797_v51 }
 0x243   : > { %v3740_v35 = vmul.f32 0.1, %v3704_v43  ;;  %4954 = vmatmul.mubr.msk.bf16.gmra.mrb[52].mxu1 %vm3815_vm9, %v3798_v22  ;;  %v3775_v29 = vmax.f32 %v3703_v3, %v3739_v2 }
 0x244   : > { %v3738_v41 = vmul.f32 0.1, %v3702_v63  ;;  %v4925_v47 = vpop.f32.mrb[24].mxu0  ;;  %v3773_v12 = vmax.f32 %v3701_v34, %v3737_v11 }
 0x245   : > { %v3776_v36 = vmax.f32 %v3704_v43, %v3740_v35  ;;  %v4997_v39 = vadd.f32 %v4925_v47, %v6233_v46  ;;  %v3591_v57 = vpop.f32.mrb[25].mxu0 }
 0x246   : > { %v3774_v38 = vmax.f32 %v3702_v63, %v3738_v41  ;;  %v4998_v42 = vadd.f32 %v3591_v57, %v6235_v20  ;;  %v4926_v7 = vpop.f32.mrb[26].mxu0 }
 0x247   : > { %v3800_v50 = vpack.c.bf16 %v3776_v36, %v3775_v29  ;;  %v3707_v30 = vadd.f32 %v4997_v39, %v6260_v0  ;;  %v4999_v59 = vadd.f32 %v4926_v7, %v6237_v52  ;;  %v3594_v25 = vpop.f32.mrb[27].mxu0 }
 0x248   : > { %v3799_v56 = vpack.c.bf16 %v3774_v38, %v3773_v12  ;;  %v3705_v44 = vadd.f32 %v4998_v42, %v6260_v0  ;;  %v5000_v61 = vadd.f32 %v3594_v25, %v6239_v60 }
 0x249   : > { %v3743_v27 = vmul.f32 0.1, %v3707_v30  ;;  %v3708_v46 = vadd.f32 %v4999_v59, %v6260_v0 }
 0x24a   : > { %v3741_v19 = vmul.f32 0.1, %v3705_v44  ;;  %v3706_v40 = vadd.f32 %v5000_v61, %v6260_v0  ;;  %4957 = vmatprep.mubr.msk.bf16.mxu1 %vm3815_vm9, %v3799_v56 }
 0x24b   : > { %v3744_v20 = vmul.f32 0.1, %v3708_v46  ;;  %4958 = vmatmul.mubr.msk.bf16.gmra.mrb[56].mxu1 %vm3815_vm9, %v3800_v50  ;;  %v3779_v52 = vmax.f32 %v3707_v30, %v3743_v27 }
 0x24c   : > { %v3742_v62 = vmul.f32 0.1, %v3706_v40  ;;  %v4929_v8 = vpop.f32.mrb[28].mxu0  ;;  %v3777_v15 = vmax.f32 %v3705_v44, %v3741_v19 }
 0x24d   : > { %v3780_v10 = vmax.f32 %v3708_v46, %v3744_v20  ;;  %v5001_v14 = vadd.f32 %v4929_v8, %v6241_v49  ;;  %v3607_v5 = vpop.f32.mrb[29].mxu0 }
 0x24e   : > { %v3778_v60 = vmax.f32 %v3706_v40, %v3742_v62  ;;  %v5002_v55 = vadd.f32 %v3607_v5, %v6243_v13  ;;  %v4930_v58 = vpop.f32.mrb[30].mxu0 }
 0x24f   : > { %v3802_v54 = vpack.c.bf16 %v3780_v10, %v3779_v52  ;;  %v3711_v32 = vadd.f32 %v5001_v14, %v6260_v0  ;;  %v5003_v33 = vadd.f32 %v4930_v58, %v6245_v9  ;;  %v3610_v31 = vpop.f32.mrb[31].mxu0 }
 0x250   : > { %v3801_v23 = vpack.c.bf16 %v3778_v60, %v3777_v15  ;;  %v3709_v37 = vadd.f32 %v5002_v55, %v6260_v0  ;;  %v5004_v21 = vadd.f32 %v3610_v31, %v6247_v6 }
 0x251   : > { %v3747_v48 = vmul.f32 0.1, %v3711_v32  ;;  %v3712_v49 = vadd.f32 %v5003_v33, %v6260_v0 }
 0x252   : > { %v3745_v26 = vmul.f32 0.1, %v3709_v37  ;;  %v3710_v28 = vadd.f32 %v5004_v21, %v6260_v0  ;;  %4961 = vmatprep.mubr.msk.bf16.mxu1 %vm3815_vm9, %v3801_v23 }
 0x253   : > { %v3748_v13 = vmul.f32 0.1, %v3712_v49  ;;  %4962 = vmatmul.mubr.msk.bf16.gmra.mrb[60].mxu1 %vm3815_vm9, %v3802_v54  ;;  %v3783_v9 = vmax.f32 %v3711_v32, %v3747_v48 }
 0x254   : > { %v3746_v4 = vmul.f32 0.1, %v3710_v28  ;;  %v4933_v22 = vpop.f32.mrb[32].mxu0  ;;  %v3781_v51 = vmax.f32 %v3709_v37, %v3745_v26 }
 0x255   : > { %v3784_v3 = vmax.f32 %v3712_v49, %v3748_v13  ;;  %v5005_v53 = vadd.f32 %v4933_v22, %v6249_v18  ;;  %v3623_v24 = vpop.f32.mrb[33].mxu0 }
 0x256   : > { %v3782_v6 = vmax.f32 %v3710_v28, %v3746_v4  ;;  %v5006_v34 = vadd.f32 %v3623_v24, %v6251_v1  ;;  %v4934_v45 = vpop.f32.mrb[34].mxu0 }
 0x257   : > { %v3804_v2 = vpack.c.bf16 %v3784_v3, %v3783_v9  ;;  %v3715_v43 = vadd.f32 %v5005_v53, %v6260_v0  ;;  %v5007_v11 = vadd.f32 %v4934_v45, %v6253_v16  ;;  %v3626_v63 = vpop.f32.mrb[35].mxu0 }
 0x258   : > { %v3803_v35 = vpack.c.bf16 %v3782_v6, %v3781_v51  ;;  %v3713_v41 = vadd.f32 %v5006_v34, %v6260_v0  ;;  %v5008_v47 = vadd.f32 %v3626_v63, %v6255_v17  ;;  %v6348_v17 = vld [vmem:[%s6434_s4] ss:$0 sm:$0xff] }
 0x259   : > { %v3751_v29 = vmul.f32 0.1, %v3715_v43  ;;  %v3716_v18 = vadd.f32 %v5007_v11, %v6260_v0 }
 0x25a   : > { %v3749_v36 = vmul.f32 0.1, %v3713_v41  ;;  %v3714_v39 = vadd.f32 %v5008_v47, %v6260_v0  ;;  %4965 = vmatprep.mubr.msk.bf16.mxu1 %vm3815_vm9, %v3803_v35 }
 0x25b   : > { %v3752_v1 = vmul.f32 0.1, %v3716_v18  ;;  %4966 = vmatmul.mubr.msk.bf16.gmra.mrb[64].mxu1 %vm3815_vm9, %v3804_v2  ;;  %v3787_v16 = vmax.f32 %v3715_v43, %v3751_v29 }
 0x25c   : > { %v3750_v57 = vmul.f32 0.1, %v3714_v39  ;;  %v3785_v38 = vmax.f32 %v3713_v41, %v3749_v36 }
 0x25d   : > { %v3788_v12 = vmax.f32 %v3716_v18, %v3752_v1 }
 0x25e   : > { %v3786_v42 = vmax.f32 %v3714_v39, %v3750_v57 }
 0x25f   : > { %v3806_v7 = vpack.c.bf16 %v3788_v12, %v3787_v16 }
 0x260   : > { %v3805_v50 = vpack.c.bf16 %v3786_v42, %v3785_v38 }
 0x262   : > { %4969 = vmatprep.mubr.msk.bf16.mxu1 %vm3815_vm9, %v3805_v50 }
 0x263   : > { %4970 = vmatmul.mubr.msk.bf16.gmra.mrb[68].mxu1 %vm3815_vm9, %v3806_v7 }
 0x2f6   : > { %v4939_v0 = vpop.f32.mrb[36].mxu1 }
 0x2f7   : > { %v3917_v30 = vadd.f32 %v4939_v0, %v6348_v17  ;;  %v3908_v59 = vpop.f32.mrb[37].mxu1 }
 0x2f8   : > { %v3909_v25 = vadd.f32 %v6348_v17, %v3908_v59  ;;  %v4940_v56 = vpop.f32.mrb[38].mxu1 }
 0x2f9   : > { %4053 = vst [vmem:[%s6353_s28 + $0x10] sm:$0xff] %v3917_v30  ;;  %v3920_v44 = vadd.f32 %v4940_v56, %v6348_v17  ;;  %v3911_v61 = vpop.f32.mrb[39].mxu1 }
 0x2fa   : > { %4051 = vst [vmem:[%s6353_s28] sm:$0xff] %v3909_v25  ;;  %v3912_v27 = vadd.f32 %v6348_v17, %v3911_v61 }
 0x2fb   : > { %4054 = vst [vmem:[%s6353_s28 + $0x18] sm:$0xff] %v3920_v44 }
 0x2fc   : > { %4052 = vst [vmem:[%s6353_s28 + $0x8] sm:$0xff] %v3912_v27 }
 0x2fe   : > { %v4943_v46 = vpop.f32.mrb[40].mxu1 }
 0x2ff   : > { %v3933_v19 = vadd.f32 %v4943_v46, %v6348_v17  ;;  %v3924_v40 = vpop.f32.mrb[41].mxu1 }
 0x300   : > { %v3925_v20 = vadd.f32 %v6348_v17, %v3924_v40  ;;  %v4944_v62 = vpop.f32.mrb[42].mxu1 }
 0x301   : > { %4057 = vst [vmem:[%s6353_s28 + $0x30] sm:$0xff] %v3933_v19  ;;  %v3936_v8 = vadd.f32 %v4944_v62, %v6348_v17  ;;  %v3927_v52 = vpop.f32.mrb[43].mxu1 }
 0x302   : > { %4055 = vst [vmem:[%s6353_s28 + $0x20] sm:$0xff] %v3925_v20  ;;  %v3928_v10 = vadd.f32 %v6348_v17, %v3927_v52 }
 0x303   : > { %4058 = vst [vmem:[%s6353_s28 + $0x38] sm:$0xff] %v3936_v8 }
 0x304   : > { %4056 = vst [vmem:[%s6353_s28 + $0x28] sm:$0xff] %v3928_v10 }
 0x306   : > { %v4947_v14 = vpop.f32.mrb[44].mxu1 }
 0x307   : > { %v3949_v5 = vadd.f32 %v4947_v14, %v6348_v17  ;;  %v3940_v15 = vpop.f32.mrb[45].mxu1 }
 0x308   : > { %v3941_v60 = vadd.f32 %v6348_v17, %v3940_v15  ;;  %v4948_v55 = vpop.f32.mrb[46].mxu1 }
 0x309   : > { %4061 = vst [vmem:[%s6353_s28 + $0x50] sm:$0xff] %v3949_v5  ;;  %v3952_v58 = vadd.f32 %v4948_v55, %v6348_v17  ;;  %v3943_v54 = vpop.f32.mrb[47].mxu1 }
 0x30a   : > { %4059 = vst [vmem:[%s6353_s28 + $0x40] sm:$0xff] %v3941_v60  ;;  %v3944_v32 = vadd.f32 %v6348_v17, %v3943_v54 }
 0x30b   : > { %4062 = vst [vmem:[%s6353_s28 + $0x58] sm:$0xff] %v3952_v58 }
 0x30c   : > { %4060 = vst [vmem:[%s6353_s28 + $0x48] sm:$0xff] %v3944_v32 }
 0x30e   : > { %v4951_v33 = vpop.f32.mrb[48].mxu1 }
 0x30f   : > { %v3965_v31 = vadd.f32 %v4951_v33, %v6348_v17  ;;  %v3956_v23 = vpop.f32.mrb[49].mxu1 }
 0x310   : > { %v3957_v37 = vadd.f32 %v6348_v17, %v3956_v23  ;;  %v4952_v21 = vpop.f32.mrb[50].mxu1 }
 0x311   : > { %4065 = vst [vmem:[%s6353_s28 + $0x70] sm:$0xff] %v3965_v31  ;;  %v3968_v48 = vadd.f32 %v4952_v21, %v6348_v17  ;;  %v3959_v49 = vpop.f32.mrb[51].mxu1 }
 0x312   : > { %4063 = vst [vmem:[%s6353_s28 + $0x60] sm:$0xff] %v3957_v37  ;;  %v3960_v26 = vadd.f32 %v6348_v17, %v3959_v49 }
 0x313   : > { %4066 = vst [vmem:[%s6353_s28 + $0x78] sm:$0xff] %v3968_v48 }
 0x314   : > { %4064 = vst [vmem:[%s6353_s28 + $0x68] sm:$0xff] %v3960_v26 }
 0x316   : > { %v4955_v28 = vpop.f32.mrb[52].mxu1 }
 0x317   : > { %v3981_v13 = vadd.f32 %v4955_v28, %v6348_v17  ;;  %v3972_v4 = vpop.f32.mrb[53].mxu1 }
 0x318   : > { %v3973_v22 = vadd.f32 %v6348_v17, %v3972_v4  ;;  %v4956_v9 = vpop.f32.mrb[54].mxu1 }
 0x319   : > { %4069 = vst [vmem:[%s6353_s28 + $0x90] sm:$0xff] %v3981_v13  ;;  %v3984_v3 = vadd.f32 %v4956_v9, %v6348_v17  ;;  %v3975_v53 = vpop.f32.mrb[55].mxu1 }
 0x31a   : > { %4067 = vst [vmem:[%s6353_s28 + $0x80] sm:$0xff] %v3973_v22  ;;  %v3976_v24 = vadd.f32 %v6348_v17, %v3975_v53 }
 0x31b   : > { %4070 = vst [vmem:[%s6353_s28 + $0x98] sm:$0xff] %v3984_v3 }
 0x31c   : > { %4068 = vst [vmem:[%s6353_s28 + $0x88] sm:$0xff] %v3976_v24 }
 0x31e   : > { %v4959_v51 = vpop.f32.mrb[56].mxu1 }
 0x31f   : > { %v3997_v6 = vadd.f32 %v4959_v51, %v6348_v17  ;;  %v3988_v34 = vpop.f32.mrb[57].mxu1 }
 0x320   : > { %v3989_v45 = vadd.f32 %v6348_v17, %v3988_v34  ;;  %v4960_v2 = vpop.f32.mrb[58].mxu1 }
 0x321   : > { %4073 = vst [vmem:[%s6353_s28 + $0xb0] sm:$0xff] %v3997_v6  ;;  %v4000_v43 = vadd.f32 %v4960_v2, %v6348_v17  ;;  %v3991_v11 = vpop.f32.mrb[59].mxu1 }
 0x322   : > { %4071 = vst [vmem:[%s6353_s28 + $0xa0] sm:$0xff] %v3989_v45  ;;  %v3992_v63 = vadd.f32 %v6348_v17, %v3991_v11 }
 0x323   : > { %4074 = vst [vmem:[%s6353_s28 + $0xb8] sm:$0xff] %v4000_v43 }
 0x324   : > { %4072 = vst [vmem:[%s6353_s28 + $0xa8] sm:$0xff] %v3992_v63 }
 0x326   : > { %v4963_v35 = vpop.f32.mrb[60].mxu1 }
 0x327   : > { %v4013_v41 = vadd.f32 %v4963_v35, %v6348_v17  ;;  %v4004_v47 = vpop.f32.mrb[61].mxu1 }
 0x328   : > { %v4005_v29 = vadd.f32 %v6348_v17, %v4004_v47  ;;  %v4964_v18 = vpop.f32.mrb[62].mxu1 }
 0x329   : > { %4077 = vst [vmem:[%s6353_s28 + $0xd0] sm:$0xff] %v4013_v41  ;;  %v4016_v36 = vadd.f32 %v4964_v18, %v6348_v17  ;;  %v4007_v39 = vpop.f32.mrb[63].mxu1 }
 0x32a   : > { %4075 = vst [vmem:[%s6353_s28 + $0xc0] sm:$0xff] %v4005_v29  ;;  %v4008_v1 = vadd.f32 %v6348_v17, %v4007_v39 }
 0x32b   : > { %4078 = vst [vmem:[%s6353_s28 + $0xd8] sm:$0xff] %v4016_v36 }
 0x32c   : > { %4076 = vst [vmem:[%s6353_s28 + $0xc8] sm:$0xff] %v4008_v1 }
 0x32e   : > { %v4967_v57 = vpop.f32.mrb[64].mxu1 }
 0x32f   : > { %v4029_v16 = vadd.f32 %v4967_v57, %v6348_v17  ;;  %v4020_v12 = vpop.f32.mrb[65].mxu1 }
 0x330   : > { %v4021_v38 = vadd.f32 %v6348_v17, %v4020_v12  ;;  %v4968_v42 = vpop.f32.mrb[66].mxu1 }
 0x331   : > { %4081 = vst [vmem:[%s6353_s28 + $0xf0] sm:$0xff] %v4029_v16  ;;  %v4032_v7 = vadd.f32 %v4968_v42, %v6348_v17  ;;  %v4023_v50 = vpop.f32.mrb[67].mxu1 }
 0x332   : > { %4079 = vst [vmem:[%s6353_s28 + $0xe0] sm:$0xff] %v4021_v38  ;;  %v4024_v0 = vadd.f32 %v6348_v17, %v4023_v50 }
 0x333   : > { %4082 = vst [vmem:[%s6353_s28 + $0xf8] sm:$0xff] %v4032_v7 }
 0x334   : > { %4080 = vst [vmem:[%s6353_s28 + $0xe8] sm:$0xff] %v4024_v0 }
 0x336   : > { %v4971_v30 = vpop.f32.mrb[68].mxu1 }
 0x337   : > { %v4045_v59 = vadd.f32 %v4971_v30, %v6348_v17  ;;  %v4036_v25 = vpop.f32.mrb[69].mxu1 }
 0x338   : > { %v4037_v56 = vadd.f32 %v6348_v17, %v4036_v25  ;;  %v4972_v44 = vpop.f32.mrb[70].mxu1 }
 0x339   : > { %4085 = vst [vmem:[%s6353_s28 + $0x110] sm:$0xff] %v4045_v59  ;;  %v4048_v61 = vadd.f32 %v4972_v44, %v6348_v17  ;;  %v4039_v27 = vpop.f32.mrb[71].mxu1 }
 0x33a   : > { %4083 = vst [vmem:[%s6353_s28 + $0x100] sm:$0xff] %v4037_v56  ;;  %v4040_v46 = vadd.f32 %v6348_v17, %v4039_v27 }
 0x33b   : > { %4086 = vst [vmem:[%s6353_s28 + $0x118] sm:$0xff] %v4048_v61 }
 0x33c   : > { %4084 = vst [vmem:[%s6353_s28 + $0x108] sm:$0xff] %v4040_v46 }
 0x33d PF: > { %s15_s18 = sadd.s32 1, %s5362_s18  }
 0x33e   : > { %p12_p4 = scmp.ge.s32.totalorder %s15_s18, 4  }
 0x340   :  { %14 = sbr.rel (!%p12_p4) target bundleno = 1 (0x1), region = 78 }

</bundles_post_ra>
